<compile_context>
chip_gen: v6e
topology: v6e:2x2x1
jax: 0.10.0
libtpu: 0.0.40
codegen_flags: <defaults>
</compile_context>

<pallas_src>
import jax
import jax.numpy as jnp
from jax.experimental import pallas as pl
from jax.experimental.pallas import tpu as pltpu

_LANE = 128      # lane width
_SUBLANE = 8     # f32 sublane count


def _make_lstm_kernel(num_layers, hidden_size, seq_len, batch_padded):
    H, L, T, Bp = hidden_size, num_layers, seq_len, batch_padded
    G = 4 * H

    def kernel(*refs):
        x_ref = refs[0]                          # (T*Bp, I)  bf16, time-major flattened
        w_refs = refs[1:1 + 3 * L]               # per layer: w_ih_T (bf16), w_hh_T (bf16), b (f32)
        fc_w_ref = refs[1 + 3 * L]               # (H, Cp)  bf16
        fc_b_ref = refs[2 + 3 * L]               # (1, Cp)  f32
        out_ref = refs[3 + 3 * L]                # (Bp, Cp) f32

        w_ih_list = [w_refs[3 * l][...] for l in range(L)]       # (in_l, 4H) bf16
        w_hh_list = [w_refs[3 * l + 1][...] for l in range(L)]   # (H, 4H)    bf16
        b_list = [w_refs[3 * l + 2][...] for l in range(L)]      # (1, 4H)    f32

        # Hoisted layer-0 input projection + bias for the entire sequence: one wide
        # bf16 matmul with T*Bp rows instead of T tiny per-step matmuls.
        gates0 = jnp.dot(x_ref[...], w_ih_list[0],
                         preferred_element_type=jnp.float32) + b_list[0]   # (T*Bp, 4H) f32

        # Hoisted lane mask: gate order (i, f, o, g) -> sigmoid on lanes [0, 3H),
        # tanh on lanes [3H, 4H). Hoisted out of the loops (JAX doesn't CSE broadcasts).
        lane = jax.lax.broadcasted_iota(jnp.int32, (Bp, G), 1)
        sig_mask = lane < 3 * H

        def cell(gates_f32, c_prev, first):
            # Full-vreg EUP pushes + one VPU select instead of misaligned pre-slices.
            act = jnp.where(sig_mask, jax.nn.sigmoid(gates_f32), jnp.tanh(gates_f32))
            i_g = act[:, 0 * H:1 * H]
            f_g = act[:, 1 * H:2 * H]
            o_g = act[:, 2 * H:3 * H]
            g_g = act[:, 3 * H:4 * H]
            c = i_g * g_g if first else f_g * c_prev + i_g * g_g   # c0 == 0 fast path
            h_bf = (o_g * jnp.tanh(c)).astype(jnp.bfloat16)        # h only feeds matmuls
            return h_bf, c

        h = [None] * L   # bf16, loop-carried in vregs
        c = [None] * L   # f32,  loop-carried in vregs

        for t in range(T):                       # fully unrolled wavefront
            # ---- layer 0: precomputed input gates + (t>0) recurrent term ----
            g0 = gates0[t * Bp:(t + 1) * Bp, :]                   # static, sublane-aligned
            if t > 0:
                g0 = g0 + jnp.dot(h[0], w_hh_list[0],
                                  preferred_element_type=jnp.float32)
            h[0], c[0] = cell(g0, c[0], t == 0)

            # ---- layers 1..L-1 consume h[l-1] of this same timestep (wavefront) ----
            for l in range(1, L):
                gl = jnp.dot(h[l - 1], w_ih_list[l],
                             preferred_element_type=jnp.float32) + b_list[l]
                if t > 0:
                    gl = gl + jnp.dot(h[l], w_hh_list[l],
                                      preferred_element_type=jnp.float32)
                h[l], c[l] = cell(gl, c[l], t == 0)

        # dropout(out[:, -1, :]) is identity at inference; final Linear (lane-dense, padded).
        out_ref[...] = (jnp.dot(h[L - 1], fc_w_ref[...],
                                preferred_element_type=jnp.float32)
                        + fc_b_ref[...])

    return kernel


def _reorder_gates(w):
    """Permute PyTorch LSTM gate blocks (i,f,g,o) -> (i,f,o,g) along axis 0."""
    i, f, g, o = jnp.split(w, 4, axis=0)
    return jnp.concatenate([i, f, o, g], axis=0)


def prepare_params(layer_params, fc_w, fc_b):
    """One-time weight prep (amortize across calls): gate reorder, transpose,
    bf16 cast of matmul operands, lane-dense (128-wide) padding of the classifier."""
    L = len(layer_params)
    H = layer_params[0][1].shape[1]              # w_hh: (4H, H)
    C = fc_w.shape[0]
    Cp = max(_LANE, ((C + _LANE - 1) // _LANE) * _LANE)

    inputs = []
    for (w_ih, w_hh, b_ih, b_hh) in layer_params:
        w_ih_r = _reorder_gates(w_ih.astype(jnp.float32))                 # (4H, in_l)
        w_hh_r = _reorder_gates(w_hh.astype(jnp.float32))                 # (4H, H)
        b_r = _reorder_gates((b_ih + b_hh).astype(jnp.float32))           # (4H,)
        inputs.append(jnp.transpose(w_ih_r).astype(jnp.bfloat16))         # (in_l, 4H) bf16
        inputs.append(jnp.transpose(w_hh_r).astype(jnp.bfloat16))         # (H, 4H)    bf16
        inputs.append(b_r.reshape(1, 4 * H))                              # (1, 4H)    f32

    fc_w_T = jnp.zeros((H, Cp), jnp.float32).at[:, :C].set(
        jnp.transpose(fc_w.astype(jnp.float32)))
    fc_b_p = jnp.zeros((1, Cp), jnp.float32).at[0, :C].set(fc_b.astype(jnp.float32))
    inputs.append(fc_w_T.astype(jnp.bfloat16))                            # (H, Cp)  bf16
    inputs.append(fc_b_p)                                                 # (1, Cp)  f32
    return tuple(inputs), L, H, C, Cp


def hand_gesture_lstm_forward(x, prepared):
    """x: (B, T, I) float32 (PyTorch batch_first). Returns (B, num_classes) float32."""
    weight_inputs, L, H, C, Cp = prepared
    B, T, I = x.shape
    Bp = max(_SUBLANE, ((B + _SUBLANE - 1) // _SUBLANE) * _SUBLANE)

    # Pad batch to the f32 sublane (padding rows are free on the MXU), go time-major,
    # flatten to (T*Bp, I), cast matmul operand to bf16.
    x_p = jnp.zeros((Bp, T, I), jnp.float32).at[:B].set(x.astype(jnp.float32))
    x_flat = jnp.transpose(x_p, (1, 0, 2)).reshape(T * Bp, I).astype(jnp.bfloat16)

    kernel = _make_lstm_kernel(L, H, T, Bp)
    out_p = pl.pallas_call(
        kernel,
        out_shape=jax.ShapeDtypeStruct((Bp, Cp), jnp.float32),
        in_specs=[pl.BlockSpec(memory_space=pltpu.MemorySpace.VMEM)]
        * (1 + len(weight_inputs)),
        out_specs=pl.BlockSpec(memory_space=pltpu.MemorySpace.VMEM),
    )(x_flat, *weight_inputs)
    return out_p[:B, :C]


def reference_forward(x, layer_params, fc_w, fc_b):
    """Pure-JAX f32 reference mirroring nn.LSTM (batch_first, gate order i,f,g,o) + Linear."""
    B, T, _ = x.shape
    inp = x
    for (w_ih, w_hh, b_ih, b_hh) in layer_params:
        H = w_hh.shape[1]
        h = jnp.zeros((B, H), jnp.float32)
        c = jnp.zeros((B, H), jnp.float32)
        outs = []
        for t in range(T):
            gates = inp[:, t, :] @ w_ih.T + h @ w_hh.T + b_ih + b_hh
            i = jax.nn.sigmoid(gates[:, 0:H])
            f = jax.nn.sigmoid(gates[:, H:2 * H])
            g = jnp.tanh(gates[:, 2 * H:3 * H])
            o = jax.nn.sigmoid(gates[:, 3 * H:4 * H])
            c = f * c + i * g
            h = o * jnp.tanh(c)
            outs.append(h)
        inp = jnp.stack(outs, axis=1)
    return inp[:, -1, :] @ fc_w.T + fc_b


if __name__ == "__main__":
    # Shapes consistent with HandGestureLSTM(input_size, hidden_size, num_layers, num_classes)
    batch, seq_len = 2, 8
    input_size, hidden_size, num_layers, num_classes = 16, 32, 2, 10

    key = jax.random.PRNGKey(0)
    k_scale = 1.0 / (hidden_size ** 0.5)

    def uinit(k, shape):
        return jax.random.uniform(k, shape, jnp.float32, -k_scale, k_scale)

    keys = jax.random.split(key, 4 * num_layers + 3)
    layer_params = []
    for l in range(num_layers):
        in_l = input_size if l == 0 else hidden_size
        w_ih = uinit(keys[4 * l + 0], (4 * hidden_size, in_l))
        w_hh = uinit(keys[4 * l + 1], (4 * hidden_size, hidden_size))
        b_ih = uinit(keys[4 * l + 2], (4 * hidden_size,))
        b_hh = uinit(keys[4 * l + 3], (4 * hidden_size,))
        layer_params.append((w_ih, w_hh, b_ih, b_hh))
    fc_w = uinit(keys[4 * num_layers + 0], (num_classes, hidden_size))
    fc_b = uinit(keys[4 * num_layers + 1], (num_classes,))
    x = jax.random.normal(keys[4 * num_layers + 2], (batch, seq_len, input_size), jnp.float32)

    prepared = prepare_params(layer_params, fc_w, fc_b)   # one-time weight prep
    out = hand_gesture_lstm_forward(x, prepared)
    out = jax.block_until_ready(out)

    ref = reference_forward(x, layer_params, fc_w, fc_b)
    assert out.shape == (batch, num_classes)
    # bf16 MXU operands with f32 accumulation: slightly looser tolerance than pure f32.
    assert jnp.allclose(out, ref, atol=2e-2, rtol=2e-2), (out, ref)

    print("KERNEL_OK")
</pallas_src>

<mosaic_0001>
module attributes {stable_mosaic.version = 11 : i64} {
  func.func @kernel(%arg0: memref<64x16xbf16, #tpu.memory_space<vmem>>, %arg1: memref<16x128xbf16, #tpu.memory_space<vmem>>, %arg2: memref<32x128xbf16, #tpu.memory_space<vmem>>, %arg3: memref<1x128xf32, #tpu.memory_space<vmem>>, %arg4: memref<32x128xbf16, #tpu.memory_space<vmem>>, %arg5: memref<32x128xbf16, #tpu.memory_space<vmem>>, %arg6: memref<1x128xf32, #tpu.memory_space<vmem>>, %arg7: memref<32x128xbf16, #tpu.memory_space<vmem>>, %arg8: memref<1x128xf32, #tpu.memory_space<vmem>>, %arg9: memref<8x128xf32, #tpu.memory_space<vmem>>) attributes {dimension_semantics = [], scalar_prefetch = 0 : i64, scratch_operands = 0 : i64, tpu.core_type = #tpu.core_type<tc>} {
    %c0 = arith.constant 0 : index
    %c0_0 = arith.constant 0 : index
    %0 = vector.load %arg1[%c0, %c0_0] : memref<16x128xbf16, #tpu.memory_space<vmem>>, vector<16x128xbf16>
    %c0_1 = arith.constant 0 : index
    %c0_2 = arith.constant 0 : index
    %1 = vector.load %arg4[%c0_1, %c0_2] : memref<32x128xbf16, #tpu.memory_space<vmem>>, vector<32x128xbf16>
    %c0_3 = arith.constant 0 : index
    %c0_4 = arith.constant 0 : index
    %2 = vector.load %arg2[%c0_3, %c0_4] : memref<32x128xbf16, #tpu.memory_space<vmem>>, vector<32x128xbf16>
    %c0_5 = arith.constant 0 : index
    %c0_6 = arith.constant 0 : index
    %3 = vector.load %arg5[%c0_5, %c0_6] : memref<32x128xbf16, #tpu.memory_space<vmem>>, vector<32x128xbf16>
    %c0_7 = arith.constant 0 : index
    %c0_8 = arith.constant 0 : index
    %4 = vector.load %arg3[%c0_7, %c0_8] : memref<1x128xf32, #tpu.memory_space<vmem>>, vector<1x128xf32>
    %c0_9 = arith.constant 0 : index
    %c0_10 = arith.constant 0 : index
    %5 = vector.load %arg6[%c0_9, %c0_10] : memref<1x128xf32, #tpu.memory_space<vmem>>, vector<1x128xf32>
    %c0_11 = arith.constant 0 : index
    %c0_12 = arith.constant 0 : index
    %6 = vector.load %arg0[%c0_11, %c0_12] : memref<64x16xbf16, #tpu.memory_space<vmem>>, vector<64x16xbf16>
    %cst = arith.constant dense<0.000000e+00> : vector<64x128xf32>
    %7 = tpu.matmul %6, %0, %cst {dimension_numbers = #tpu.dot_dimension_numbers<[1], [0], [0], [1], [0, 0, 1, 1], [], []>} : vector<64x16xbf16>, vector<16x128xbf16>, vector<64x128xf32> -> vector<64x128xf32>
    %8 = vector.broadcast %4 : vector<1x128xf32> to vector<64x128xf32>
    %9 = arith.addf %7, %8 : vector<64x128xf32>
    %10 = tpu.iota {dimensions = array<i32: 1>} : vector<8x128xi32>
    %c96_i32 = arith.constant 96 : i32
    %11 = vector.broadcast %c96_i32 : i32 to vector<8x128xi32>
    %12 = arith.cmpi slt, %10, %11 : vector<8x128xi32>
    %13 = vector.extract_strided_slice %9 {offsets = [0, 0], sizes = [8, 128], strides = [1, 1]} : vector<64x128xf32> to vector<8x128xf32>
    %14 = arith.negf %13 : vector<8x128xf32>
    %15 = math.exp %14 : vector<8x128xf32>
    %cst_13 = arith.constant 1.000000e+00 : f32
    %16 = vector.broadcast %cst_13 : f32 to vector<8x128xf32>
    %17 = arith.addf %16, %15 : vector<8x128xf32>
    %18 = arith.divf %16, %17 : vector<8x128xf32>
    %19 = math.tanh %13 : vector<8x128xf32>
    %20 = arith.select %12, %18, %19 : vector<8x128xi1>, vector<8x128xf32>
    %21 = vector.extract_strided_slice %20 {offsets = [0, 0], sizes = [8, 32], strides = [1, 1]} : vector<8x128xf32> to vector<8x32xf32>
    %22 = vector.extract_strided_slice %20 {offsets = [0, 64], sizes = [8, 32], strides = [1, 1]} : vector<8x128xf32> to vector<8x32xf32>
    %23 = vector.extract_strided_slice %20 {offsets = [0, 96], sizes = [8, 32], strides = [1, 1]} : vector<8x128xf32> to vector<8x32xf32>
    %24 = arith.mulf %21, %23 : vector<8x32xf32>
    %25 = math.tanh %24 : vector<8x32xf32>
    %26 = arith.mulf %22, %25 : vector<8x32xf32>
    %27 = arith.truncf %26 : vector<8x32xf32> to vector<8x32xbf16>
    %cst_14 = arith.constant dense<0.000000e+00> : vector<8x128xf32>
    %28 = tpu.matmul %27, %1, %cst_14 {dimension_numbers = #tpu.dot_dimension_numbers<[1], [0], [0], [1], [0, 0, 1, 1], [], []>} : vector<8x32xbf16>, vector<32x128xbf16>, vector<8x128xf32> -> vector<8x128xf32>
    %29 = vector.broadcast %5 : vector<1x128xf32> to vector<8x128xf32>
    %30 = arith.addf %28, %29 : vector<8x128xf32>
    %31 = arith.negf %30 : vector<8x128xf32>
    %32 = math.exp %31 : vector<8x128xf32>
    %cst_15 = arith.constant 1.000000e+00 : f32
    %33 = vector.broadcast %cst_15 : f32 to vector<8x128xf32>
    %34 = arith.addf %33, %32 : vector<8x128xf32>
    %35 = arith.divf %33, %34 : vector<8x128xf32>
    %36 = math.tanh %30 : vector<8x128xf32>
    %37 = arith.select %12, %35, %36 : vector<8x128xi1>, vector<8x128xf32>
    %38 = vector.extract_strided_slice %37 {offsets = [0, 0], sizes = [8, 32], strides = [1, 1]} : vector<8x128xf32> to vector<8x32xf32>
    %39 = vector.extract_strided_slice %37 {offsets = [0, 64], sizes = [8, 32], strides = [1, 1]} : vector<8x128xf32> to vector<8x32xf32>
    %40 = vector.extract_strided_slice %37 {offsets = [0, 96], sizes = [8, 32], strides = [1, 1]} : vector<8x128xf32> to vector<8x32xf32>
    %41 = arith.mulf %38, %40 : vector<8x32xf32>
    %42 = math.tanh %41 : vector<8x32xf32>
    %43 = arith.mulf %39, %42 : vector<8x32xf32>
    %44 = arith.truncf %43 : vector<8x32xf32> to vector<8x32xbf16>
    %45 = vector.extract_strided_slice %9 {offsets = [8, 0], sizes = [8, 128], strides = [1, 1]} : vector<64x128xf32> to vector<8x128xf32>
    %cst_16 = arith.constant dense<0.000000e+00> : vector<8x128xf32>
    %46 = tpu.matmul %27, %2, %cst_16 {dimension_numbers = #tpu.dot_dimension_numbers<[1], [0], [0], [1], [0, 0, 1, 1], [], []>} : vector<8x32xbf16>, vector<32x128xbf16>, vector<8x128xf32> -> vector<8x128xf32>
    %47 = arith.addf %45, %46 : vector<8x128xf32>
    %48 = arith.negf %47 : vector<8x128xf32>
    %49 = math.exp %48 : vector<8x128xf32>
    %cst_17 = arith.constant 1.000000e+00 : f32
    %50 = vector.broadcast %cst_17 : f32 to vector<8x128xf32>
    %51 = arith.addf %50, %49 : vector<8x128xf32>
    %52 = arith.divf %50, %51 : vector<8x128xf32>
    %53 = math.tanh %47 : vector<8x128xf32>
    %54 = arith.select %12, %52, %53 : vector<8x128xi1>, vector<8x128xf32>
    %55 = vector.extract_strided_slice %54 {offsets = [0, 0], sizes = [8, 32], strides = [1, 1]} : vector<8x128xf32> to vector<8x32xf32>
    %56 = vector.extract_strided_slice %54 {offsets = [0, 32], sizes = [8, 32], strides = [1, 1]} : vector<8x128xf32> to vector<8x32xf32>
    %57 = vector.extract_strided_slice %54 {offsets = [0, 64], sizes = [8, 32], strides = [1, 1]} : vector<8x128xf32> to vector<8x32xf32>
    %58 = vector.extract_strided_slice %54 {offsets = [0, 96], sizes = [8, 32], strides = [1, 1]} : vector<8x128xf32> to vector<8x32xf32>
    %59 = arith.mulf %56, %24 : vector<8x32xf32>
    %60 = arith.mulf %55, %58 : vector<8x32xf32>
    %61 = arith.addf %59, %60 : vector<8x32xf32>
    %62 = math.tanh %61 : vector<8x32xf32>
    %63 = arith.mulf %57, %62 : vector<8x32xf32>
    %64 = arith.truncf %63 : vector<8x32xf32> to vector<8x32xbf16>
    %cst_18 = arith.constant dense<0.000000e+00> : vector<8x128xf32>
    %65 = tpu.matmul %64, %1, %cst_18 {dimension_numbers = #tpu.dot_dimension_numbers<[1], [0], [0], [1], [0, 0, 1, 1], [], []>} : vector<8x32xbf16>, vector<32x128xbf16>, vector<8x128xf32> -> vector<8x128xf32>
    %66 = vector.broadcast %5 : vector<1x128xf32> to vector<8x128xf32>
    %67 = arith.addf %65, %66 : vector<8x128xf32>
    %cst_19 = arith.constant dense<0.000000e+00> : vector<8x128xf32>
    %68 = tpu.matmul %44, %3, %cst_19 {dimension_numbers = #tpu.dot_dimension_numbers<[1], [0], [0], [1], [0, 0, 1, 1], [], []>} : vector<8x32xbf16>, vector<32x128xbf16>, vector<8x128xf32> -> vector<8x128xf32>
    %69 = arith.addf %67, %68 : vector<8x128xf32>
    %70 = arith.negf %69 : vector<8x128xf32>
    %71 = math.exp %70 : vector<8x128xf32>
    %cst_20 = arith.constant 1.000000e+00 : f32
    %72 = vector.broadcast %cst_20 : f32 to vector<8x128xf32>
    %73 = arith.addf %72, %71 : vector<8x128xf32>
    %74 = arith.divf %72, %73 : vector<8x128xf32>
    %75 = math.tanh %69 : vector<8x128xf32>
    %76 = arith.select %12, %74, %75 : vector<8x128xi1>, vector<8x128xf32>
    %77 = vector.extract_strided_slice %76 {offsets = [0, 0], sizes = [8, 32], strides = [1, 1]} : vector<8x128xf32> to vector<8x32xf32>
    %78 = vector.extract_strided_slice %76 {offsets = [0, 32], sizes = [8, 32], strides = [1, 1]} : vector<8x128xf32> to vector<8x32xf32>
    %79 = vector.extract_strided_slice %76 {offsets = [0, 64], sizes = [8, 32], strides = [1, 1]} : vector<8x128xf32> to vector<8x32xf32>
    %80 = vector.extract_strided_slice %76 {offsets = [0, 96], sizes = [8, 32], strides = [1, 1]} : vector<8x128xf32> to vector<8x32xf32>
    %81 = arith.mulf %78, %41 : vector<8x32xf32>
    %82 = arith.mulf %77, %80 : vector<8x32xf32>
    %83 = arith.addf %81, %82 : vector<8x32xf32>
    %84 = math.tanh %83 : vector<8x32xf32>
    %85 = arith.mulf %79, %84 : vector<8x32xf32>
    %86 = arith.truncf %85 : vector<8x32xf32> to vector<8x32xbf16>
    %87 = vector.extract_strided_slice %9 {offsets = [16, 0], sizes = [8, 128], strides = [1, 1]} : vector<64x128xf32> to vector<8x128xf32>
    %cst_21 = arith.constant dense<0.000000e+00> : vector<8x128xf32>
    %88 = tpu.matmul %64, %2, %cst_21 {dimension_numbers = #tpu.dot_dimension_numbers<[1], [0], [0], [1], [0, 0, 1, 1], [], []>} : vector<8x32xbf16>, vector<32x128xbf16>, vector<8x128xf32> -> vector<8x128xf32>
    %89 = arith.addf %87, %88 : vector<8x128xf32>
    %90 = arith.negf %89 : vector<8x128xf32>
    %91 = math.exp %90 : vector<8x128xf32>
    %cst_22 = arith.constant 1.000000e+00 : f32
    %92 = vector.broadcast %cst_22 : f32 to vector<8x128xf32>
    %93 = arith.addf %92, %91 : vector<8x128xf32>
    %94 = arith.divf %92, %93 : vector<8x128xf32>
    %95 = math.tanh %89 : vector<8x128xf32>
    %96 = arith.select %12, %94, %95 : vector<8x128xi1>, vector<8x128xf32>
    %97 = vector.extract_strided_slice %96 {offsets = [0, 0], sizes = [8, 32], strides = [1, 1]} : vector<8x128xf32> to vector<8x32xf32>
    %98 = vector.extract_strided_slice %96 {offsets = [0, 32], sizes = [8, 32], strides = [1, 1]} : vector<8x128xf32> to vector<8x32xf32>
    %99 = vector.extract_strided_slice %96 {offsets = [0, 64], sizes = [8, 32], strides = [1, 1]} : vector<8x128xf32> to vector<8x32xf32>
    %100 = vector.extract_strided_slice %96 {offsets = [0, 96], sizes = [8, 32], strides = [1, 1]} : vector<8x128xf32> to vector<8x32xf32>
    %101 = arith.mulf %98, %61 : vector<8x32xf32>
    %102 = arith.mulf %97, %100 : vector<8x32xf32>
    %103 = arith.addf %101, %102 : vector<8x32xf32>
    %104 = math.tanh %103 : vector<8x32xf32>
    %105 = arith.mulf %99, %104 : vector<8x32xf32>
    %106 = arith.truncf %105 : vector<8x32xf32> to vector<8x32xbf16>
    %cst_23 = arith.constant dense<0.000000e+00> : vector<8x128xf32>
    %107 = tpu.matmul %106, %1, %cst_23 {dimension_numbers = #tpu.dot_dimension_numbers<[1], [0], [0], [1], [0, 0, 1, 1], [], []>} : vector<8x32xbf16>, vector<32x128xbf16>, vector<8x128xf32> -> vector<8x128xf32>
    %108 = vector.broadcast %5 : vector<1x128xf32> to vector<8x128xf32>
    %109 = arith.addf %107, %108 : vector<8x128xf32>
    %cst_24 = arith.constant dense<0.000000e+00> : vector<8x128xf32>
    %110 = tpu.matmul %86, %3, %cst_24 {dimension_numbers = #tpu.dot_dimension_numbers<[1], [0], [0], [1], [0, 0, 1, 1], [], []>} : vector<8x32xbf16>, vector<32x128xbf16>, vector<8x128xf32> -> vector<8x128xf32>
    %111 = arith.addf %109, %110 : vector<8x128xf32>
    %112 = arith.negf %111 : vector<8x128xf32>
    %113 = math.exp %112 : vector<8x128xf32>
    %cst_25 = arith.constant 1.000000e+00 : f32
    %114 = vector.broadcast %cst_25 : f32 to vector<8x128xf32>
    %115 = arith.addf %114, %113 : vector<8x128xf32>
    %116 = arith.divf %114, %115 : vector<8x128xf32>
    %117 = math.tanh %111 : vector<8x128xf32>
    %118 = arith.select %12, %116, %117 : vector<8x128xi1>, vector<8x128xf32>
    %119 = vector.extract_strided_slice %118 {offsets = [0, 0], sizes = [8, 32], strides = [1, 1]} : vector<8x128xf32> to vector<8x32xf32>
    %120 = vector.extract_strided_slice %118 {offsets = [0, 32], sizes = [8, 32], strides = [1, 1]} : vector<8x128xf32> to vector<8x32xf32>
    %121 = vector.extract_strided_slice %118 {offsets = [0, 64], sizes = [8, 32], strides = [1, 1]} : vector<8x128xf32> to vector<8x32xf32>
    %122 = vector.extract_strided_slice %118 {offsets = [0, 96], sizes = [8, 32], strides = [1, 1]} : vector<8x128xf32> to vector<8x32xf32>
    %123 = arith.mulf %120, %83 : vector<8x32xf32>
    %124 = arith.mulf %119, %122 : vector<8x32xf32>
    %125 = arith.addf %123, %124 : vector<8x32xf32>
    %126 = math.tanh %125 : vector<8x32xf32>
    %127 = arith.mulf %121, %126 : vector<8x32xf32>
    %128 = arith.truncf %127 : vector<8x32xf32> to vector<8x32xbf16>
    %129 = vector.extract_strided_slice %9 {offsets = [24, 0], sizes = [8, 128], strides = [1, 1]} : vector<64x128xf32> to vector<8x128xf32>
    %cst_26 = arith.constant dense<0.000000e+00> : vector<8x128xf32>
    %130 = tpu.matmul %106, %2, %cst_26 {dimension_numbers = #tpu.dot_dimension_numbers<[1], [0], [0], [1], [0, 0, 1, 1], [], []>} : vector<8x32xbf16>, vector<32x128xbf16>, vector<8x128xf32> -> vector<8x128xf32>
    %131 = arith.addf %129, %130 : vector<8x128xf32>
    %132 = arith.negf %131 : vector<8x128xf32>
    %133 = math.exp %132 : vector<8x128xf32>
    %cst_27 = arith.constant 1.000000e+00 : f32
    %134 = vector.broadcast %cst_27 : f32 to vector<8x128xf32>
    %135 = arith.addf %134, %133 : vector<8x128xf32>
    %136 = arith.divf %134, %135 : vector<8x128xf32>
    %137 = math.tanh %131 : vector<8x128xf32>
    %138 = arith.select %12, %136, %137 : vector<8x128xi1>, vector<8x128xf32>
    %139 = vector.extract_strided_slice %138 {offsets = [0, 0], sizes = [8, 32], strides = [1, 1]} : vector<8x128xf32> to vector<8x32xf32>
    %140 = vector.extract_strided_slice %138 {offsets = [0, 32], sizes = [8, 32], strides = [1, 1]} : vector<8x128xf32> to vector<8x32xf32>
    %141 = vector.extract_strided_slice %138 {offsets = [0, 64], sizes = [8, 32], strides = [1, 1]} : vector<8x128xf32> to vector<8x32xf32>
    %142 = vector.extract_strided_slice %138 {offsets = [0, 96], sizes = [8, 32], strides = [1, 1]} : vector<8x128xf32> to vector<8x32xf32>
    %143 = arith.mulf %140, %103 : vector<8x32xf32>
    %144 = arith.mulf %139, %142 : vector<8x32xf32>
    %145 = arith.addf %143, %144 : vector<8x32xf32>
    %146 = math.tanh %145 : vector<8x32xf32>
    %147 = arith.mulf %141, %146 : vector<8x32xf32>
    %148 = arith.truncf %147 : vector<8x32xf32> to vector<8x32xbf16>
    %cst_28 = arith.constant dense<0.000000e+00> : vector<8x128xf32>
    %149 = tpu.matmul %148, %1, %cst_28 {dimension_numbers = #tpu.dot_dimension_numbers<[1], [0], [0], [1], [0, 0, 1, 1], [], []>} : vector<8x32xbf16>, vector<32x128xbf16>, vector<8x128xf32> -> vector<8x128xf32>
    %150 = vector.broadcast %5 : vector<1x128xf32> to vector<8x128xf32>
    %151 = arith.addf %149, %150 : vector<8x128xf32>
    %cst_29 = arith.constant dense<0.000000e+00> : vector<8x128xf32>
    %152 = tpu.matmul %128, %3, %cst_29 {dimension_numbers = #tpu.dot_dimension_numbers<[1], [0], [0], [1], [0, 0, 1, 1], [], []>} : vector<8x32xbf16>, vector<32x128xbf16>, vector<8x128xf32> -> vector<8x128xf32>
    %153 = arith.addf %151, %152 : vector<8x128xf32>
    %154 = arith.negf %153 : vector<8x128xf32>
    %155 = math.exp %154 : vector<8x128xf32>
    %cst_30 = arith.constant 1.000000e+00 : f32
    %156 = vector.broadcast %cst_30 : f32 to vector<8x128xf32>
    %157 = arith.addf %156, %155 : vector<8x128xf32>
    %158 = arith.divf %156, %157 : vector<8x128xf32>
    %159 = math.tanh %153 : vector<8x128xf32>
    %160 = arith.select %12, %158, %159 : vector<8x128xi1>, vector<8x128xf32>
    %161 = vector.extract_strided_slice %160 {offsets = [0, 0], sizes = [8, 32], strides = [1, 1]} : vector<8x128xf32> to vector<8x32xf32>
    %162 = vector.extract_strided_slice %160 {offsets = [0, 32], sizes = [8, 32], strides = [1, 1]} : vector<8x128xf32> to vector<8x32xf32>
    %163 = vector.extract_strided_slice %160 {offsets = [0, 64], sizes = [8, 32], strides = [1, 1]} : vector<8x128xf32> to vector<8x32xf32>
    %164 = vector.extract_strided_slice %160 {offsets = [0, 96], sizes = [8, 32], strides = [1, 1]} : vector<8x128xf32> to vector<8x32xf32>
    %165 = arith.mulf %162, %125 : vector<8x32xf32>
    %166 = arith.mulf %161, %164 : vector<8x32xf32>
    %167 = arith.addf %165, %166 : vector<8x32xf32>
    %168 = math.tanh %167 : vector<8x32xf32>
    %169 = arith.mulf %163, %168 : vector<8x32xf32>
    %170 = arith.truncf %169 : vector<8x32xf32> to vector<8x32xbf16>
    %171 = vector.extract_strided_slice %9 {offsets = [32, 0], sizes = [8, 128], strides = [1, 1]} : vector<64x128xf32> to vector<8x128xf32>
    %cst_31 = arith.constant dense<0.000000e+00> : vector<8x128xf32>
    %172 = tpu.matmul %148, %2, %cst_31 {dimension_numbers = #tpu.dot_dimension_numbers<[1], [0], [0], [1], [0, 0, 1, 1], [], []>} : vector<8x32xbf16>, vector<32x128xbf16>, vector<8x128xf32> -> vector<8x128xf32>
    %173 = arith.addf %171, %172 : vector<8x128xf32>
    %174 = arith.negf %173 : vector<8x128xf32>
    %175 = math.exp %174 : vector<8x128xf32>
    %cst_32 = arith.constant 1.000000e+00 : f32
    %176 = vector.broadcast %cst_32 : f32 to vector<8x128xf32>
    %177 = arith.addf %176, %175 : vector<8x128xf32>
    %178 = arith.divf %176, %177 : vector<8x128xf32>
    %179 = math.tanh %173 : vector<8x128xf32>
    %180 = arith.select %12, %178, %179 : vector<8x128xi1>, vector<8x128xf32>
    %181 = vector.extract_strided_slice %180 {offsets = [0, 0], sizes = [8, 32], strides = [1, 1]} : vector<8x128xf32> to vector<8x32xf32>
    %182 = vector.extract_strided_slice %180 {offsets = [0, 32], sizes = [8, 32], strides = [1, 1]} : vector<8x128xf32> to vector<8x32xf32>
    %183 = vector.extract_strided_slice %180 {offsets = [0, 64], sizes = [8, 32], strides = [1, 1]} : vector<8x128xf32> to vector<8x32xf32>
    %184 = vector.extract_strided_slice %180 {offsets = [0, 96], sizes = [8, 32], strides = [1, 1]} : vector<8x128xf32> to vector<8x32xf32>
    %185 = arith.mulf %182, %145 : vector<8x32xf32>
    %186 = arith.mulf %181, %184 : vector<8x32xf32>
    %187 = arith.addf %185, %186 : vector<8x32xf32>
    %188 = math.tanh %187 : vector<8x32xf32>
    %189 = arith.mulf %183, %188 : vector<8x32xf32>
    %190 = arith.truncf %189 : vector<8x32xf32> to vector<8x32xbf16>
    %cst_33 = arith.constant dense<0.000000e+00> : vector<8x128xf32>
    %191 = tpu.matmul %190, %1, %cst_33 {dimension_numbers = #tpu.dot_dimension_numbers<[1], [0], [0], [1], [0, 0, 1, 1], [], []>} : vector<8x32xbf16>, vector<32x128xbf16>, vector<8x128xf32> -> vector<8x128xf32>
    %192 = vector.broadcast %5 : vector<1x128xf32> to vector<8x128xf32>
    %193 = arith.addf %191, %192 : vector<8x128xf32>
    %cst_34 = arith.constant dense<0.000000e+00> : vector<8x128xf32>
    %194 = tpu.matmul %170, %3, %cst_34 {dimension_numbers = #tpu.dot_dimension_numbers<[1], [0], [0], [1], [0, 0, 1, 1], [], []>} : vector<8x32xbf16>, vector<32x128xbf16>, vector<8x128xf32> -> vector<8x128xf32>
    %195 = arith.addf %193, %194 : vector<8x128xf32>
    %196 = arith.negf %195 : vector<8x128xf32>
    %197 = math.exp %196 : vector<8x128xf32>
    %cst_35 = arith.constant 1.000000e+00 : f32
    %198 = vector.broadcast %cst_35 : f32 to vector<8x128xf32>
    %199 = arith.addf %198, %197 : vector<8x128xf32>
    %200 = arith.divf %198, %199 : vector<8x128xf32>
    %201 = math.tanh %195 : vector<8x128xf32>
    %202 = arith.select %12, %200, %201 : vector<8x128xi1>, vector<8x128xf32>
    %203 = vector.extract_strided_slice %202 {offsets = [0, 0], sizes = [8, 32], strides = [1, 1]} : vector<8x128xf32> to vector<8x32xf32>
    %204 = vector.extract_strided_slice %202 {offsets = [0, 32], sizes = [8, 32], strides = [1, 1]} : vector<8x128xf32> to vector<8x32xf32>
    %205 = vector.extract_strided_slice %202 {offsets = [0, 64], sizes = [8, 32], strides = [1, 1]} : vector<8x128xf32> to vector<8x32xf32>
    %206 = vector.extract_strided_slice %202 {offsets = [0, 96], sizes = [8, 32], strides = [1, 1]} : vector<8x128xf32> to vector<8x32xf32>
    %207 = arith.mulf %204, %167 : vector<8x32xf32>
    %208 = arith.mulf %203, %206 : vector<8x32xf32>
    %209 = arith.addf %207, %208 : vector<8x32xf32>
    %210 = math.tanh %209 : vector<8x32xf32>
    %211 = arith.mulf %205, %210 : vector<8x32xf32>
    %212 = arith.truncf %211 : vector<8x32xf32> to vector<8x32xbf16>
    %213 = vector.extract_strided_slice %9 {offsets = [40, 0], sizes = [8, 128], strides = [1, 1]} : vector<64x128xf32> to vector<8x128xf32>
    %cst_36 = arith.constant dense<0.000000e+00> : vector<8x128xf32>
    %214 = tpu.matmul %190, %2, %cst_36 {dimension_numbers = #tpu.dot_dimension_numbers<[1], [0], [0], [1], [0, 0, 1, 1], [], []>} : vector<8x32xbf16>, vector<32x128xbf16>, vector<8x128xf32> -> vector<8x128xf32>
    %215 = arith.addf %213, %214 : vector<8x128xf32>
    %216 = arith.negf %215 : vector<8x128xf32>
    %217 = math.exp %216 : vector<8x128xf32>
    %cst_37 = arith.constant 1.000000e+00 : f32
    %218 = vector.broadcast %cst_37 : f32 to vector<8x128xf32>
    %219 = arith.addf %218, %217 : vector<8x128xf32>
    %220 = arith.divf %218, %219 : vector<8x128xf32>
    %221 = math.tanh %215 : vector<8x128xf32>
    %222 = arith.select %12, %220, %221 : vector<8x128xi1>, vector<8x128xf32>
    %223 = vector.extract_strided_slice %222 {offsets = [0, 0], sizes = [8, 32], strides = [1, 1]} : vector<8x128xf32> to vector<8x32xf32>
    %224 = vector.extract_strided_slice %222 {offsets = [0, 32], sizes = [8, 32], strides = [1, 1]} : vector<8x128xf32> to vector<8x32xf32>
    %225 = vector.extract_strided_slice %222 {offsets = [0, 64], sizes = [8, 32], strides = [1, 1]} : vector<8x128xf32> to vector<8x32xf32>
    %226 = vector.extract_strided_slice %222 {offsets = [0, 96], sizes = [8, 32], strides = [1, 1]} : vector<8x128xf32> to vector<8x32xf32>
    %227 = arith.mulf %224, %187 : vector<8x32xf32>
    %228 = arith.mulf %223, %226 : vector<8x32xf32>
    %229 = arith.addf %227, %228 : vector<8x32xf32>
    %230 = math.tanh %229 : vector<8x32xf32>
    %231 = arith.mulf %225, %230 : vector<8x32xf32>
    %232 = arith.truncf %231 : vector<8x32xf32> to vector<8x32xbf16>
    %cst_38 = arith.constant dense<0.000000e+00> : vector<8x128xf32>
    %233 = tpu.matmul %232, %1, %cst_38 {dimension_numbers = #tpu.dot_dimension_numbers<[1], [0], [0], [1], [0, 0, 1, 1], [], []>} : vector<8x32xbf16>, vector<32x128xbf16>, vector<8x128xf32> -> vector<8x128xf32>
    %234 = vector.broadcast %5 : vector<1x128xf32> to vector<8x128xf32>
    %235 = arith.addf %233, %234 : vector<8x128xf32>
    %cst_39 = arith.constant dense<0.000000e+00> : vector<8x128xf32>
    %236 = tpu.matmul %212, %3, %cst_39 {dimension_numbers = #tpu.dot_dimension_numbers<[1], [0], [0], [1], [0, 0, 1, 1], [], []>} : vector<8x32xbf16>, vector<32x128xbf16>, vector<8x128xf32> -> vector<8x128xf32>
    %237 = arith.addf %235, %236 : vector<8x128xf32>
    %238 = arith.negf %237 : vector<8x128xf32>
    %239 = math.exp %238 : vector<8x128xf32>
    %cst_40 = arith.constant 1.000000e+00 : f32
    %240 = vector.broadcast %cst_40 : f32 to vector<8x128xf32>
    %241 = arith.addf %240, %239 : vector<8x128xf32>
    %242 = arith.divf %240, %241 : vector<8x128xf32>
    %243 = math.tanh %237 : vector<8x128xf32>
    %244 = arith.select %12, %242, %243 : vector<8x128xi1>, vector<8x128xf32>
    %245 = vector.extract_strided_slice %244 {offsets = [0, 0], sizes = [8, 32], strides = [1, 1]} : vector<8x128xf32> to vector<8x32xf32>
    %246 = vector.extract_strided_slice %244 {offsets = [0, 32], sizes = [8, 32], strides = [1, 1]} : vector<8x128xf32> to vector<8x32xf32>
    %247 = vector.extract_strided_slice %244 {offsets = [0, 64], sizes = [8, 32], strides = [1, 1]} : vector<8x128xf32> to vector<8x32xf32>
    %248 = vector.extract_strided_slice %244 {offsets = [0, 96], sizes = [8, 32], strides = [1, 1]} : vector<8x128xf32> to vector<8x32xf32>
    %249 = arith.mulf %246, %209 : vector<8x32xf32>
    %250 = arith.mulf %245, %248 : vector<8x32xf32>
    %251 = arith.addf %249, %250 : vector<8x32xf32>
    %252 = math.tanh %251 : vector<8x32xf32>
    %253 = arith.mulf %247, %252 : vector<8x32xf32>
    %254 = arith.truncf %253 : vector<8x32xf32> to vector<8x32xbf16>
    %255 = vector.extract_strided_slice %9 {offsets = [48, 0], sizes = [8, 128], strides = [1, 1]} : vector<64x128xf32> to vector<8x128xf32>
    %cst_41 = arith.constant dense<0.000000e+00> : vector<8x128xf32>
    %256 = tpu.matmul %232, %2, %cst_41 {dimension_numbers = #tpu.dot_dimension_numbers<[1], [0], [0], [1], [0, 0, 1, 1], [], []>} : vector<8x32xbf16>, vector<32x128xbf16>, vector<8x128xf32> -> vector<8x128xf32>
    %257 = arith.addf %255, %256 : vector<8x128xf32>
    %258 = arith.negf %257 : vector<8x128xf32>
    %259 = math.exp %258 : vector<8x128xf32>
    %cst_42 = arith.constant 1.000000e+00 : f32
    %260 = vector.broadcast %cst_42 : f32 to vector<8x128xf32>
    %261 = arith.addf %260, %259 : vector<8x128xf32>
    %262 = arith.divf %260, %261 : vector<8x128xf32>
    %263 = math.tanh %257 : vector<8x128xf32>
    %264 = arith.select %12, %262, %263 : vector<8x128xi1>, vector<8x128xf32>
    %265 = vector.extract_strided_slice %264 {offsets = [0, 0], sizes = [8, 32], strides = [1, 1]} : vector<8x128xf32> to vector<8x32xf32>
    %266 = vector.extract_strided_slice %264 {offsets = [0, 32], sizes = [8, 32], strides = [1, 1]} : vector<8x128xf32> to vector<8x32xf32>
    %267 = vector.extract_strided_slice %264 {offsets = [0, 64], sizes = [8, 32], strides = [1, 1]} : vector<8x128xf32> to vector<8x32xf32>
    %268 = vector.extract_strided_slice %264 {offsets = [0, 96], sizes = [8, 32], strides = [1, 1]} : vector<8x128xf32> to vector<8x32xf32>
    %269 = arith.mulf %266, %229 : vector<8x32xf32>
    %270 = arith.mulf %265, %268 : vector<8x32xf32>
    %271 = arith.addf %269, %270 : vector<8x32xf32>
    %272 = math.tanh %271 : vector<8x32xf32>
    %273 = arith.mulf %267, %272 : vector<8x32xf32>
    %274 = arith.truncf %273 : vector<8x32xf32> to vector<8x32xbf16>
    %cst_43 = arith.constant dense<0.000000e+00> : vector<8x128xf32>
    %275 = tpu.matmul %274, %1, %cst_43 {dimension_numbers = #tpu.dot_dimension_numbers<[1], [0], [0], [1], [0, 0, 1, 1], [], []>} : vector<8x32xbf16>, vector<32x128xbf16>, vector<8x128xf32> -> vector<8x128xf32>
    %276 = vector.broadcast %5 : vector<1x128xf32> to vector<8x128xf32>
    %277 = arith.addf %275, %276 : vector<8x128xf32>
    %cst_44 = arith.constant dense<0.000000e+00> : vector<8x128xf32>
    %278 = tpu.matmul %254, %3, %cst_44 {dimension_numbers = #tpu.dot_dimension_numbers<[1], [0], [0], [1], [0, 0, 1, 1], [], []>} : vector<8x32xbf16>, vector<32x128xbf16>, vector<8x128xf32> -> vector<8x128xf32>
    %279 = arith.addf %277, %278 : vector<8x128xf32>
    %280 = arith.negf %279 : vector<8x128xf32>
    %281 = math.exp %280 : vector<8x128xf32>
    %cst_45 = arith.constant 1.000000e+00 : f32
    %282 = vector.broadcast %cst_45 : f32 to vector<8x128xf32>
    %283 = arith.addf %282, %281 : vector<8x128xf32>
    %284 = arith.divf %282, %283 : vector<8x128xf32>
    %285 = math.tanh %279 : vector<8x128xf32>
    %286 = arith.select %12, %284, %285 : vector<8x128xi1>, vector<8x128xf32>
    %287 = vector.extract_strided_slice %286 {offsets = [0, 0], sizes = [8, 32], strides = [1, 1]} : vector<8x128xf32> to vector<8x32xf32>
    %288 = vector.extract_strided_slice %286 {offsets = [0, 32], sizes = [8, 32], strides = [1, 1]} : vector<8x128xf32> to vector<8x32xf32>
    %289 = vector.extract_strided_slice %286 {offsets = [0, 64], sizes = [8, 32], strides = [1, 1]} : vector<8x128xf32> to vector<8x32xf32>
    %290 = vector.extract_strided_slice %286 {offsets = [0, 96], sizes = [8, 32], strides = [1, 1]} : vector<8x128xf32> to vector<8x32xf32>
    %291 = arith.mulf %288, %251 : vector<8x32xf32>
    %292 = arith.mulf %287, %290 : vector<8x32xf32>
    %293 = arith.addf %291, %292 : vector<8x32xf32>
    %294 = math.tanh %293 : vector<8x32xf32>
    %295 = arith.mulf %289, %294 : vector<8x32xf32>
    %296 = arith.truncf %295 : vector<8x32xf32> to vector<8x32xbf16>
    %297 = vector.extract_strided_slice %9 {offsets = [56, 0], sizes = [8, 128], strides = [1, 1]} : vector<64x128xf32> to vector<8x128xf32>
    %cst_46 = arith.constant dense<0.000000e+00> : vector<8x128xf32>
    %298 = tpu.matmul %274, %2, %cst_46 {dimension_numbers = #tpu.dot_dimension_numbers<[1], [0], [0], [1], [0, 0, 1, 1], [], []>} : vector<8x32xbf16>, vector<32x128xbf16>, vector<8x128xf32> -> vector<8x128xf32>
    %299 = arith.addf %297, %298 : vector<8x128xf32>
    %300 = arith.negf %299 : vector<8x128xf32>
    %301 = math.exp %300 : vector<8x128xf32>
    %cst_47 = arith.constant 1.000000e+00 : f32
    %302 = vector.broadcast %cst_47 : f32 to vector<8x128xf32>
    %303 = arith.addf %302, %301 : vector<8x128xf32>
    %304 = arith.divf %302, %303 : vector<8x128xf32>
    %305 = math.tanh %299 : vector<8x128xf32>
    %306 = arith.select %12, %304, %305 : vector<8x128xi1>, vector<8x128xf32>
    %307 = vector.extract_strided_slice %306 {offsets = [0, 0], sizes = [8, 32], strides = [1, 1]} : vector<8x128xf32> to vector<8x32xf32>
    %308 = vector.extract_strided_slice %306 {offsets = [0, 32], sizes = [8, 32], strides = [1, 1]} : vector<8x128xf32> to vector<8x32xf32>
    %309 = vector.extract_strided_slice %306 {offsets = [0, 64], sizes = [8, 32], strides = [1, 1]} : vector<8x128xf32> to vector<8x32xf32>
    %310 = vector.extract_strided_slice %306 {offsets = [0, 96], sizes = [8, 32], strides = [1, 1]} : vector<8x128xf32> to vector<8x32xf32>
    %311 = arith.mulf %308, %271 : vector<8x32xf32>
    %312 = arith.mulf %307, %310 : vector<8x32xf32>
    %313 = arith.addf %311, %312 : vector<8x32xf32>
    %314 = math.tanh %313 : vector<8x32xf32>
    %315 = arith.mulf %309, %314 : vector<8x32xf32>
    %316 = arith.truncf %315 : vector<8x32xf32> to vector<8x32xbf16>
    %cst_48 = arith.constant dense<0.000000e+00> : vector<8x128xf32>
    %317 = tpu.matmul %316, %1, %cst_48 {dimension_numbers = #tpu.dot_dimension_numbers<[1], [0], [0], [1], [0, 0, 1, 1], [], []>} : vector<8x32xbf16>, vector<32x128xbf16>, vector<8x128xf32> -> vector<8x128xf32>
    %318 = vector.broadcast %5 : vector<1x128xf32> to vector<8x128xf32>
    %319 = arith.addf %317, %318 : vector<8x128xf32>
    %cst_49 = arith.constant dense<0.000000e+00> : vector<8x128xf32>
    %320 = tpu.matmul %296, %3, %cst_49 {dimension_numbers = #tpu.dot_dimension_numbers<[1], [0], [0], [1], [0, 0, 1, 1], [], []>} : vector<8x32xbf16>, vector<32x128xbf16>, vector<8x128xf32> -> vector<8x128xf32>
    %321 = arith.addf %319, %320 : vector<8x128xf32>
    %322 = arith.negf %321 : vector<8x128xf32>
    %323 = math.exp %322 : vector<8x128xf32>
    %cst_50 = arith.constant 1.000000e+00 : f32
    %324 = vector.broadcast %cst_50 : f32 to vector<8x128xf32>
    %325 = arith.addf %324, %323 : vector<8x128xf32>
    %326 = arith.divf %324, %325 : vector<8x128xf32>
    %327 = math.tanh %321 : vector<8x128xf32>
    %328 = arith.select %12, %326, %327 : vector<8x128xi1>, vector<8x128xf32>
    %329 = vector.extract_strided_slice %328 {offsets = [0, 0], sizes = [8, 32], strides = [1, 1]} : vector<8x128xf32> to vector<8x32xf32>
    %330 = vector.extract_strided_slice %328 {offsets = [0, 32], sizes = [8, 32], strides = [1, 1]} : vector<8x128xf32> to vector<8x32xf32>
    %331 = vector.extract_strided_slice %328 {offsets = [0, 64], sizes = [8, 32], strides = [1, 1]} : vector<8x128xf32> to vector<8x32xf32>
    %332 = vector.extract_strided_slice %328 {offsets = [0, 96], sizes = [8, 32], strides = [1, 1]} : vector<8x128xf32> to vector<8x32xf32>
    %333 = arith.mulf %330, %293 : vector<8x32xf32>
    %334 = arith.mulf %329, %332 : vector<8x32xf32>
    %335 = arith.addf %333, %334 : vector<8x32xf32>
    %336 = math.tanh %335 : vector<8x32xf32>
    %337 = arith.mulf %331, %336 : vector<8x32xf32>
    %338 = arith.truncf %337 : vector<8x32xf32> to vector<8x32xbf16>
    %c0_51 = arith.constant 0 : index
    %c0_52 = arith.constant 0 : index
    %339 = vector.load %arg7[%c0_51, %c0_52] : memref<32x128xbf16, #tpu.memory_space<vmem>>, vector<32x128xbf16>
    %cst_53 = arith.constant dense<0.000000e+00> : vector<8x128xf32>
    %340 = tpu.matmul %338, %339, %cst_53 {dimension_numbers = #tpu.dot_dimension_numbers<[1], [0], [0], [1], [0, 0, 1, 1], [], []>} : vector<8x32xbf16>, vector<32x128xbf16>, vector<8x128xf32> -> vector<8x128xf32>
    %c0_54 = arith.constant 0 : index
    %c0_55 = arith.constant 0 : index
    %341 = vector.load %arg8[%c0_54, %c0_55] : memref<1x128xf32, #tpu.memory_space<vmem>>, vector<1x128xf32>
    %342 = vector.broadcast %341 : vector<1x128xf32> to vector<8x128xf32>
    %343 = arith.addf %340, %342 : vector<8x128xf32>
    %c0_56 = arith.constant 0 : index
    %c0_57 = arith.constant 0 : index
    %344 = vector.load %arg9[%c0_56, %c0_57] : memref<8x128xf32, #tpu.memory_space<vmem>>, vector<8x128xf32>
    tpu.vector_store %arg9[%c0_56, %c0_57], %343 {strides = array<i32>} : memref<8x128xf32, #tpu.memory_space<vmem>>, vector<8x128xf32>,
    return
  }
}

</mosaic_0001>

<bundles_post_ra>
// kernel: tpu_custom_call.1
= control target key start
LH: loop header
LB: loop body
LE: loop exit
PB: predicated region body
PF: predicated region fallthrough
CT: control target
= control target key end

     0   :  { %14 = vsyncpa [#allocation3], 0  ;;  %s2748_s0 = inlined_call_operand.vmem [shape: bf16[64,16], index: 0, kind: input, shape index: {}]   ;;  %s2749_s1 = inlined_call_operand.hbm [shape: bf16[16,128], index: 1, kind: input, shape index: {}]   ;;  %s2750_s2 = inlined_call_operand.vmem [shape: bf16[32,128], index: 2, kind: input, shape index: {}]   ;;  %s2751_s3 = inlined_call_operand.vmem [shape: f32[1,128], index: 3, kind: input, shape index: {}]   ;;  %s2752_s4 = inlined_call_operand.vmem [shape: bf16[32,128], index: 4, kind: input, shape index: {}]   ;;  %s2753_s5 = inlined_call_operand.vmem [shape: bf16[32,128], index: 5, kind: input, shape index: {}]   ;;  %s2754_s6 = inlined_call_operand.vmem [shape: f32[1,128], index: 6, kind: input, shape index: {}]   ;;  %s2755_s7 = inlined_call_operand.hbm [shape: bf16[32,128], index: 7, kind: input, shape index: {}]   ;;  %s2756_s8 = inlined_call_operand.vmem [shape: f32[1,128], index: 8, kind: input, shape index: {}]   ;;  %s2757_s9 = inlined_call_operand.hbm [shape: f32[8,128], index: 9, kind: output, shape index: {}]  }
   0x1   :  { %15 = vsyncpa [#allocation6], 0 }
   0x2   :  { %16 = vsyncpa [#allocation4], 0  ;;  %s2270_s30 = smov [#allocation2]  }
   0x3   :  { %s24_s10 = sshll.u32 %s2270_s30, 4  ;;  %s25_s10 = int_to_ptr.vmem [resolvable:$true] %s24_s10 }
   0x4   :  { %s2212_s11 = scalar_lea.vmem %s25_s10, 128  ;;  %p2217_p1 = scmp.lt.s32.totalorder %s25_s10, %s25_s10 }
   0x5   :  { %p2213_p0 = scmp.ne.s32.totalorder %s25_s10, %s2212_s11  ;;  %p2218_p2 = scmp.lt.s32.totalorder %s2212_s11, %s2212_s11 }
   0x7   :  { %p2219_p3 = por %p2218_p2, %p2217_p1 }
   0x9   :  { %p2220_p4 = pnand %p2219_p3, %p2213_p0 }
   0xb   :  { %2223 = shalt.err (!%p2220_p4)
}
   0xc   :  { %s2271_s12 = smov 64   ;;  %s2272_s13 = smov 4  }
   0xd   :  { %30 = dma.hbm_to_vmem [thread:$0]  %s2749_s1, 128, %s25_s10, [#allocation3], %s2271_s12, %s2271_s12, %s2272_s13  }
   0xe   :  { %s2273_s16 = smov [#allocation5]  }
   0xf   :  { %s46_s17 = sshll.u32 %s2273_s16, 4  ;;  %s47_s17 = int_to_ptr.vmem [resolvable:$true] %s46_s17 }
  0x10   :  { %s2232_s18 = scalar_lea.vmem %s47_s17, 256  ;;  %p2237_p6 = scmp.lt.s32.totalorder %s47_s17, %s47_s17 }
  0x11   :  { %p2233_p5 = scmp.ne.s32.totalorder %s47_s17, %s2232_s18  ;;  %p2238_p7 = scmp.lt.s32.totalorder %s2232_s18, %s2232_s18 }
  0x13   :  { %p2239_p8 = por %p2238_p7, %p2237_p6 }
  0x15   :  { %p2240_p9 = pnand %p2239_p8, %p2233_p5 }
  0x17   :  { %2243 = shalt.err (!%p2240_p9)
}
  0x18   :  { %52 = dma.hbm_to_vmem [thread:$0]  %s2755_s7, 256, %s47_s17, [#allocation6], %s2271_s12, %s2271_s12, %s2272_s13  }
  0x19   :  { %2264 = dma.done.wait [#allocation3], 128  }
  0x1a   :  { %2265 = vsyncadd [#allocation3], 4294967168 }
  0x1b   :  { %2266 = dma.done.wait [#allocation6], 256  }
  0x1c   :  { %2267 = vsyncadd [#allocation6], 4294967040  ;;  %v2059_v0 = vld [vmem:[#allocation2] sm:$0xff]   ;;  %vm118_vm0 = vcmask 130048   ;;  %v2061_v2 = vld [vmem:[%s2748_s0 + $0x8] sm:$0xff]   ;;  %v196_v10 = vlaneseq  ;;  %s2274_s25 = smov 32  }
  0x1d   :  { %v2060_v1 = vld [vmem:[%s2748_s0] sm:$0xff]   ;;  %1857 = vmatprep.subr.bf16.mxu0 %v2059_v0  ;;  %v2363_v17 = vld [vmem:[%s2752_s4 + $0x8] sm:$0xff]   ;;  %v2275_v18 = vmov 0.0   ;;  %vm2276_vm2 = vmmov 0   ;;  %vm240_vm3 = vcmask 261120   ;;  %s2277_s27 = smov [#allocation7]  }
  0x1e   :  { %1858 = vmatpush3.bf16.msra.mxu0 %v2059_v0  ;;  %1859 = vmatprep.mubr.msk.bf16.mxu0 %vm118_vm0, %v2060_v1  ;;  %v2351_v4 = vld [vmem:[%s2751_s3] ss:$0 sm:$0xff]  ;;  %v2354_v11 = vand.u32 127, %v196_v10  ;;  %v2388_v24 = vld [vmem:[%s2750_s2 + $0x8] sm:$0xff]   ;;  %s1714_s28 = sshll.u32 %s2277_s27, 4  ;;  %s1715_s28 = int_to_ptr.vmem [resolvable:$true] %s1714_s28 }
  0x1f   :  { %1867 = vmatprep.subr.bf16.mxu1 %v2275_v18  ;;  %1871 = vmatprep.mubr.msk.bf16.mxu1 %vm2276_vm2, %v2275_v18  ;;  %v2372_v19 = vld [vmem:[%s2752_s4] sm:$0xff]   ;;  %v2427_v58 = vld [vmem:[%s2753_s5 + $0x8] sm:$0xff]   ;;  %p2249_p11 = scmp.lt.s32.totalorder %s1715_s28, %s1715_s28 }
  0x20   :  { %vm198_vm1 = vcmp.lt.s32.totalorder %v2354_v11, 96  ;;  %1868 = vmatpush3.bf16.msra.mxu1 %v2363_v17  ;;  %1883 = vmatprep.subr.bf16.mxu0 %v2275_v18  ;;  %v2395_v26 = vld [vmem:[%s2750_s2] sm:$0xff]  }
  0x21   :  { %1860 = vmatmul.mubr.msk.bf16.vlgmr.msra.gmra.mxu0 %vm118_vm0, %v2061_v2  ;;  %1869 = vmatprep.subr.bf16.mxu1 %v2275_v18  ;;  %v2408_v27 = vld [vmem:[%s2754_s6] ss:$0 sm:$0xff]  ;;  %v2068_v2 = vld [vmem:[%s2748_s0 + $0x10] sm:$0xff]  }
  0x22   :  { %1884 = vmatpush3.bf16.msra.mxu0 %v2363_v17  ;;  %v2433_v60 = vld [vmem:[%s2753_s5] sm:$0xff]   ;;  %1863 = vmatprep.mubr.msk.bf16.mxu0 %vm118_vm0, %v2068_v2 }
  0x23   :  { %1885 = vmatprep.subr.bf16.mxu0 %v2275_v18 }
  0x24   :  { %1870 = vmatpush3.bf16.msra.mxu1 %v2372_v19 }
  0x25   :  { %1875 = vmatprep.subr.bf16.mxu1 %v2275_v18 }
  0x26   :  { %1886 = vmatpush3.bf16.msra.mxu0 %v2372_v19 }
  0x27   :  { %1899 = vmatprep.subr.bf16.mxu0 %v2275_v18 }
  0xe1   :  { %v2346_v3 = vpop.f32.mrf.mxu0 }
  0xe3   :  { %v165_v5 = vpop.f32.mrf.mxu0 }
  0xe4   :  { %v166_v6 = vadd.f32 %v2351_v4, %v165_v5  ;;  %v2069_v5 = vld [vmem:[%s2748_s0 + $0x18] sm:$0xff]  }
  0xe5   :  { %v2410_v28 = vpop.f32.mrf.mxu0  ;;  %1864 = vmatmul.mubr.msk.bf16.gmra.mxu0 %vm118_vm0, %v2069_v5 }
  0xe6   :  { %v1734_v7 = vmul.f32 -1.442695, %v166_v6  ;;  %1887 = vmatprep.mubr.msk.bf16.mxu0 %vm2276_vm2, %v2275_v18 }
  0xe7   :  { %v168_v33 = vpop.f32.mrf.mxu0 }
  0xe8   :  { %2072 = vpow2.f32 %v1734_v7  ;;  %v169_v36 = vadd.f32 %v2351_v4, %v168_v33 }
  0xe9   :  { %2074 = vtanh.f32 %v166_v6 }
  0xf5   :  { %v2073_v8 = vpop.eup %2072 }
  0xf6   :  { %v202_v9 = vadd.f32 1.0, %v2073_v8  ;;  %v2075_v12 = vpop.eup %2074 }
  0xf8   :  { %2076 = vrcp.f32 %v202_v9 }
 0x105   :  { %v2077_v13 = vpop.eup %2076 }
 0x106   :  { %v206_v14 = vsel %vm198_vm1, %v2077_v13, %v2075_v12 }
 0x107   :  { %208 = vrot.lane.b32.xlu0 %v206_v14, %s2274_s25 }
 0x179   :  { %v209_v15 = vpop.permute.xlu0 %208 }
 0x17a   :  { %v211_v16 = vmul.f32 %v209_v15, %v206_v14 }
 0x17c   :  { %2078 = vtanh.f32 %v211_v16 }
 0x189   :  { %v2079_v20 = vpop.eup %2078 }
 0x18a   :  { %214 = vrot.lane.b32.xlu0 %v2079_v20, %s2271_s12 }
 0x18e   :  { %366 = vrot.lane.b32.xlu0 %v211_v16, %s2274_s25 }
 0x1fc   :  { %v215_v21 = vpop.permute.xlu0 %214 }
 0x1fd   :  { %v217_v22 = vmul.f32 %v215_v21, %v206_v14  ;;  %v2476_v21 = vpop.f32.mrf.mxu0 }
 0x1ff   :  { %v218_v23 = vpack.c.bf16 %v217_v22, %v217_v22  ;;  %v2478_v22 = vpop.f32.mrf.mxu0 }
 0x200   :  { %v367_v53 = vpop.permute.xlu0 %366 }
 0x201   :  { %226 = vrot.lane.b32.xlu1 %v218_v23, %s2271_s12  ;;  %v2480_v23 = vpop.f32.mrf.mxu0 }
 0x273   :  { %v227_v25 = vpop.permute.xlu1 %226 }
 0x274   :  { %1872 = vmatmul.mubr.msk.bf16.vlgmr.msra.gmra.mxu1 %vm240_vm3, %v227_v25 }
 0x275   :  { %1876 = vmatpush3.bf16.msra.mxu1 %v2388_v24  ;;  %1879 = vmatprep.mubr.msk.bf16.mxu1 %vm2276_vm2, %v2275_v18 }
 0x276   :  { %1877 = vmatprep.subr.bf16.mxu1 %v2275_v18 }
 0x279   :  { %1878 = vmatpush3.bf16.msra.mxu1 %v2395_v26 }
 0x27a   :  { %1891 = vmatprep.subr.bf16.mxu1 %v2275_v18 }
 0x27c   :  { %1880 = vmatmul.mubr.msk.bf16.vlgmr.msra.gmra.mxu1 %vm240_vm3, %v227_v25  ;;  %v2482_v25 = vpop.f32.mrf.mxu0 }
 0x27d   :  { %1895 = vmatprep.mubr.msk.bf16.mxu1 %vm2276_vm2, %v2275_v18  ;;  %1892 = vmatpush3.bf16.msra.mxu1 %v2427_v58 }
 0x27e   :  { %1893 = vmatprep.subr.bf16.mxu1 %v2275_v18 }
 0x281   :  { %1894 = vmatpush3.bf16.msra.mxu1 %v2433_v60 }
 0x282   :  { %1907 = vmatprep.subr.bf16.mxu1 %v2275_v18 }
 0x334   :  { %v278_v29 = vpop.f32.mrf.mxu1 }
 0x335   :  { %v279_v30 = vadd.f32 %v2408_v27, %v278_v29 }
 0x336   :  { %v1873_v31 = vpop.f32.mrf.mxu1 }
 0x337   :  { %v1739_v32 = vmul.f32 -1.442695, %v279_v30 }
 0x338   :  { %v281_v34 = vpop.f32.mrf.mxu1 }
 0x339   :  { %2080 = vpow2.f32 %v1739_v32 }
 0x33a   :  { %v1874_v35 = vpop.f32.mrf.mxu1 }
 0x33c   :  { %v350_v37 = vpop.f32.mrf.mxu1 }
 0x33d   :  { %v356_v38 = vadd.f32 %v350_v37, %v169_v36  ;;  %v174_v36 = vadd.f32 %v2346_v3, %v2351_v4 }
 0x33e   :  { %v1881_v39 = vpop.f32.mrf.mxu1 }
 0x33f   :  { %v1743_v40 = vmul.f32 -1.442695, %v356_v38 }
 0x340   :  { %v353_v41 = vpop.f32.mrf.mxu1 }
 0x341   :  { %2082 = vpow2.f32 %v1743_v40 }
 0x342   :  { %v1882_v42 = vpop.f32.mrf.mxu1  ;;  %2084 = vtanh.f32 %v279_v30 }
 0x346   :  { %v2081_v43 = vpop.eup %2080 }
 0x347   :  { %v287_v44 = vadd.f32 1.0, %v2081_v43 }
 0x349   :  { %2086 = vrcp.f32 %v287_v44 }
 0x34a   :  { %2088 = vtanh.f32 %v356_v38 }
 0x34e   :  { %v2083_v45 = vpop.eup %2082 }
 0x34f   :  { %v360_v46 = vadd.f32 1.0, %v2083_v45  ;;  %v2085_v47 = vpop.eup %2084 }
 0x351   :  { %2090 = vrcp.f32 %v360_v46 }
 0x356   :  { %v2087_v48 = vpop.eup %2086 }
 0x357   :  { %v291_v49 = vsel %vm198_vm1, %v2087_v48, %v2085_v47  ;;  %v2089_v50 = vpop.eup %2088 }
 0x358   :  { %293 = vrot.lane.b32.xlu0 %v291_v49, %s2274_s25 }
 0x35e   :  { %v2091_v51 = vpop.eup %2090 }
 0x35f   :  { %v364_v52 = vsel %vm198_vm1, %v2091_v51, %v2089_v50 }
 0x360   :  { %371 = vrot.lane.b32.xlu1 %v364_v52, %s2274_s25  ;;  %v369_v61 = vmul.f32 %v367_v53, %v364_v52 }
 0x3ca   :  { %v294_v54 = vpop.permute.xlu0 %293 }
 0x3cb   :  { %v2420_v55 = vmul.f32 %v294_v54, %v291_v49 }
 0x3cd   :  { %2092 = vtanh.f32 %v2420_v55 }
 0x3d2   :  { %v372_v56 = vpop.permute.xlu1 %371 }
 0x3d3   :  { %v374_v57 = vmul.f32 %v372_v56, %v364_v52 }
 0x3d5   :  { %376 = vrot.lane.b32.xlu1 %v374_v57, %s2274_s25 }
 0x3da   :  { %v2093_v59 = vpop.eup %2092 }
 0x3db   :  { %299 = vrot.lane.b32.xlu0 %v2093_v59, %s2271_s12 }
 0x447   :  { %v377_v62 = vpop.permute.xlu1 %376 }
 0x448   :  { %v2439_v63 = vadd.f32 %v377_v62, %v369_v61 }
 0x44a   :  { %2094 = vtanh.f32 %v2439_v63 }
 0x44d   :  { %v300_v0 = vpop.permute.xlu0 %299 }
 0x44e   :  { %v302_v1 = vmul.f32 %v300_v0, %v291_v49 }
 0x450   :  { %v303_v6 = vpack.c.bf16 %v302_v1, %v302_v1 }
 0x452   :  { %434 = vrot.lane.b32.xlu0 %v303_v6, %s2271_s12 }
 0x457   :  { %v2095_v7 = vpop.eup %2094 }
 0x458   :  { %382 = vrot.lane.b32.xlu1 %v2095_v7, %s2274_s25 }
 0x4c4   :  { %v435_v8 = vpop.permute.xlu0 %434 }
 0x4c5   :  { %1896 = vmatmul.mubr.msk.bf16.vlgmr.msra.gmra.mxu1 %vm240_vm3, %v435_v8 }
 0x4c6   :  { %1908 = vmatpush3.bf16.msra.mxu1 %v2363_v17  ;;  %1911 = vmatprep.mubr.msk.bf16.mxu1 %vm2276_vm2, %v2275_v18 }
 0x4c7   :  { %1909 = vmatprep.subr.bf16.mxu1 %v2275_v18 }
 0x4ca   :  { %v383_v9 = vpop.permute.xlu1 %382  ;;  %1910 = vmatpush3.bf16.msra.mxu1 %v2372_v19 }
 0x4cb   :  { %v385_v10 = vmul.f32 %v383_v9, %v364_v52  ;;  %1923 = vmatprep.subr.bf16.mxu1 %v2275_v18 }
 0x4cd   :  { %v386_v12 = vpack.c.bf16 %v385_v10, %v385_v10 }
 0x4cf   :  { %388 = vrot.lane.b32.xlu1 %v386_v12, %s2271_s12 }
 0x541   :  { %v389_v13 = vpop.permute.xlu1 %388 }
 0x542   :  { %1888 = vmatmul.mubr.msk.bf16.vlgmr.msra.gmra.mxu0 %vm240_vm3, %v389_v13 }
 0x543   :  { %1900 = vmatpush3.bf16.msra.mxu0 %v2388_v24  ;;  %1903 = vmatprep.mubr.msk.bf16.mxu0 %vm2276_vm2, %v2275_v18 }
 0x544   :  { %1901 = vmatprep.subr.bf16.mxu0 %v2275_v18 }
 0x547   :  { %1902 = vmatpush3.bf16.msra.mxu0 %v2395_v26 }
 0x548   :  { %1915 = vmatprep.subr.bf16.mxu0 %v2275_v18 }
 0x54a   :  { %1904 = vmatmul.mubr.msk.bf16.vlgmr.msra.gmra.mxu0 %vm240_vm3, %v389_v13 }
 0x54b   :  { %1916 = vmatpush3.bf16.msra.mxu0 %v2427_v58  ;;  %1919 = vmatprep.mubr.msk.bf16.mxu0 %vm2276_vm2, %v2275_v18 }
 0x54c   :  { %1917 = vmatprep.subr.bf16.mxu0 %v2275_v18 }
 0x54f   :  { %1918 = vmatpush3.bf16.msra.mxu0 %v2433_v60 }
 0x550   :  { %1931 = vmatprep.subr.bf16.mxu0 %v2275_v18 }
 0x585   :  { %v485_v14 = vpop.f32.mrf.mxu1 }
 0x587   :  { %v1897_v15 = vpop.f32.mrf.mxu1 }
 0x589   :  { %v488_v16 = vpop.f32.mrf.mxu1 }
 0x58b   :  { %v1898_v20 = vpop.f32.mrf.mxu1 }
 0x602   :  { %v427_v29 = vpop.f32.mrf.mxu0 }
 0x603   :  { %v428_v30 = vadd.f32 %v2408_v27, %v427_v29 }
 0x604   :  { %v1889_v31 = vpop.f32.mrf.mxu0 }
 0x605   :  { %v491_v32 = vadd.f32 %v485_v14, %v428_v30 }
 0x606   :  { %v430_v33 = vpop.f32.mrf.mxu0 }
 0x607   :  { %v1748_v34 = vmul.f32 -1.442695, %v491_v32  ;;  %v177_v33 = vadd.f32 %v2410_v28, %v2351_v4 }
 0x608   :  { %v1890_v35 = vpop.f32.mrf.mxu0 }
 0x609   :  { %2096 = vpow2.f32 %v1748_v34 }
 0x60a   :  { %v556_v37 = vpop.f32.mrf.mxu0 }
 0x60b   :  { %v562_v38 = vadd.f32 %v556_v37, %v174_v36 }
 0x60c   :  { %v1905_v39 = vpop.f32.mrf.mxu0 }
 0x60d   :  { %v1750_v40 = vmul.f32 -1.442695, %v562_v38 }
 0x60e   :  { %v559_v41 = vpop.f32.mrf.mxu0 }
 0x60f   :  { %2098 = vpow2.f32 %v1750_v40 }
 0x610   :  { %v1906_v42 = vpop.f32.mrf.mxu0  ;;  %2100 = vtanh.f32 %v491_v32 }
 0x616   :  { %v2097_v43 = vpop.eup %2096 }
 0x617   :  { %v495_v44 = vadd.f32 1.0, %v2097_v43 }
 0x619   :  { %2102 = vrcp.f32 %v495_v44 }
 0x61a   :  { %2104 = vtanh.f32 %v562_v38 }
 0x61c   :  { %v2099_v45 = vpop.eup %2098 }
 0x61d   :  { %v566_v46 = vadd.f32 1.0, %v2099_v45  ;;  %v2101_v47 = vpop.eup %2100 }
 0x61f   :  { %2106 = vrcp.f32 %v566_v46 }
 0x626   :  { %v2103_v48 = vpop.eup %2102 }
 0x627   :  { %v499_v3 = vsel %vm198_vm1, %v2103_v48, %v2101_v47  ;;  %v2105_v49 = vpop.eup %2104 }
 0x628   :  { %506 = vrot.lane.b32.xlu0 %v499_v3, %s2274_s25 }
 0x62c   :  { %v2107_v50 = vpop.eup %2106  ;;  %501 = vrot.lane.b32.xlu0 %v2420_v55, %s2274_s25 }
 0x62d   :  { %v570_v51 = vsel %vm198_vm1, %v2107_v50, %v2105_v49 }
 0x62e   :  { %573 = vrot.lane.b32.xlu1 %v570_v51, %s2274_s25  ;;  %v571_v57 = vmul.f32 %v570_v51, %v2439_v63 }
 0x69a   :  { %v507_v54 = vpop.permute.xlu0 %506 }
 0x69b   :  { %v509_v56 = vmul.f32 %v507_v54, %v499_v3 }
 0x69e   :  { %v502_v59 = vpop.permute.xlu0 %501 }
 0x69f   :  { %v504_v55 = vmul.f32 %v502_v59, %v499_v3 }
 0x6a0   :  { %v574_v52 = vpop.permute.xlu1 %573 }
 0x6a1   :  { %v576_v53 = vmul.f32 %v574_v52, %v570_v51 }
 0x6a3   :  { %578 = vrot.lane.b32.xlu1 %v576_v53, %s2274_s25 }
 0x6a7   :  { %511 = vrot.lane.b32.xlu1 %v509_v56, %s2274_s25 }
 0x715   :  { %v579_v61 = vpop.permute.xlu1 %578 }
 0x716   :  { %v2498_v62 = vadd.f32 %v579_v61, %v571_v57 }
 0x718   :  { %2108 = vtanh.f32 %v2498_v62 }
 0x719   :  { %v512_v0 = vpop.permute.xlu1 %511 }
 0x71a   :  { %v2501_v1 = vadd.f32 %v512_v0, %v504_v55 }
 0x71c   :  { %2110 = vtanh.f32 %v2501_v1 }
 0x725   :  { %v2109_v2 = vpop.eup %2108 }
 0x726   :  { %584 = vrot.lane.b32.xlu0 %v2109_v2, %s2274_s25 }
 0x729   :  { %v2111_v5 = vpop.eup %2110 }
 0x72a   :  { %517 = vrot.lane.b32.xlu1 %v2111_v5, %s2274_s25 }
 0x798   :  { %v585_v6 = vpop.permute.xlu0 %584 }
 0x799   :  { %v587_v63 = vmul.f32 %v585_v6, %v570_v51 }
 0x79b   :  { %v588_v7 = vpack.c.bf16 %v587_v63, %v587_v63 }
 0x79c   :  { %v518_v8 = vpop.permute.xlu1 %517 }
 0x79d   :  { %v520_v9 = vmul.f32 %v518_v8, %v499_v3  ;;  %590 = vrot.lane.b32.xlu0 %v588_v7, %s2271_s12 }
 0x79f   :  { %v521_v10 = vpack.c.bf16 %v520_v9, %v520_v9 }
 0x7a1   :  { %636 = vrot.lane.b32.xlu1 %v521_v10, %s2271_s12 }
 0x80f   :  { %v591_v12 = vpop.permute.xlu0 %590 }
 0x810   :  { %1912 = vmatmul.mubr.msk.bf16.vlgmr.msra.gmra.mxu1 %vm240_vm3, %v591_v12 }
 0x811   :  { %1924 = vmatpush3.bf16.msra.mxu1 %v2388_v24  ;;  %1927 = vmatprep.mubr.msk.bf16.mxu1 %vm2276_vm2, %v2275_v18 }
 0x812   :  { %1925 = vmatprep.subr.bf16.mxu1 %v2275_v18 }
 0x813   :  { %v637_v13 = vpop.permute.xlu1 %636 }
 0x814   :  { %1920 = vmatmul.mubr.msk.bf16.vlgmr.msra.gmra.mxu0 %vm240_vm3, %v637_v13 }
 0x815   :  { %1926 = vmatpush3.bf16.msra.mxu1 %v2395_v26  ;;  %1932 = vmatpush3.bf16.msra.mxu0 %v2363_v17 }
 0x816   :  { %1939 = vmatprep.subr.bf16.mxu1 %v2275_v18  ;;  %1933 = vmatprep.subr.bf16.mxu0 %v2275_v18 }
 0x817   :  { %1935 = vmatprep.mubr.msk.bf16.mxu0 %vm2276_vm2, %v2275_v18 }
 0x818   :  { %1928 = vmatmul.mubr.msk.bf16.vlgmr.msra.gmra.mxu1 %vm240_vm3, %v591_v12 }
 0x819   :  { %1940 = vmatpush3.bf16.msra.mxu1 %v2427_v58  ;;  %1943 = vmatprep.mubr.msk.bf16.mxu1 %vm2276_vm2, %v2275_v18 }
 0x81a   :  { %1941 = vmatprep.subr.bf16.mxu1 %v2275_v18  ;;  %1934 = vmatpush3.bf16.msra.mxu0 %v2372_v19 }
 0x81b   :  { %1947 = vmatprep.subr.bf16.mxu0 %v2275_v18 }
 0x81d   :  { %1942 = vmatpush3.bf16.msra.mxu1 %v2433_v60 }
 0x81e   :  { %1955 = vmatprep.subr.bf16.mxu1 %v2275_v18 }
 0x8d0   :  { %v629_v14 = vpop.f32.mrf.mxu1 }
 0x8d1   :  { %v630_v16 = vadd.f32 %v2408_v27, %v629_v14 }
 0x8d2   :  { %v1913_v15 = vpop.f32.mrf.mxu1 }
 0x8d4   :  { %v632_v20 = vpop.f32.mrf.mxu1  ;;  %v675_v29 = vpop.f32.mrf.mxu0 }
 0x8d5   :  { %v681_v30 = vadd.f32 %v675_v29, %v630_v16 }
 0x8d6   :  { %v1914_v31 = vpop.f32.mrf.mxu1  ;;  %v1921_v32 = vpop.f32.mrf.mxu0 }
 0x8d7   :  { %v1753_v34 = vmul.f32 -1.442695, %v681_v30 }
 0x8d8   :  { %v678_v35 = vpop.f32.mrf.mxu0  ;;  %v742_v36 = vpop.f32.mrf.mxu1 }
 0x8d9   :  { %2112 = vpow2.f32 %v1753_v34  ;;  %v748_v37 = vadd.f32 %v742_v36, %v177_v33  ;;  %v182_v34 = vadd.f32 %v2351_v4, %v2478_v22 }
 0x8da   :  { %v1922_v38 = vpop.f32.mrf.mxu0  ;;  %v1929_v39 = vpop.f32.mrf.mxu1 }
 0x8db   :  { %v1755_v40 = vmul.f32 -1.442695, %v748_v37 }
 0x8dc   :  { %v745_v41 = vpop.f32.mrf.mxu1 }
 0x8dd   :  { %2114 = vpow2.f32 %v1755_v40 }
 0x8de   :  { %v1930_v42 = vpop.f32.mrf.mxu1  ;;  %2116 = vtanh.f32 %v681_v30 }
 0x8e6   :  { %v2113_v43 = vpop.eup %2112 }
 0x8e7   :  { %v685_v44 = vadd.f32 1.0, %v2113_v43 }
 0x8e9   :  { %2118 = vrcp.f32 %v685_v44 }
 0x8ea   :  { %v2115_v45 = vpop.eup %2114  ;;  %2120 = vtanh.f32 %v748_v37 }
 0x8eb   :  { %v752_v46 = vadd.f32 1.0, %v2115_v45  ;;  %v2117_v28 = vpop.eup %2116 }
 0x8ed   :  { %2122 = vrcp.f32 %v752_v46 }
 0x8f6   :  { %v2119_v47 = vpop.eup %2118 }
 0x8f7   :  { %v689_v48 = vsel %vm198_vm1, %v2119_v47, %v2117_v28  ;;  %v2121_v3 = vpop.eup %2120 }
 0x8f8   :  { %692 = vrot.lane.b32.xlu1 %v689_v48, %s2274_s25  ;;  %v690_v56 = vmul.f32 %v689_v48, %v2501_v1 }
 0x8fa   :  { %v2123_v49 = vpop.eup %2122 }
 0x8fb   :  { %v756_v50 = vsel %vm198_vm1, %v2123_v49, %v2121_v3 }
 0x8fc   :  { %759 = vrot.lane.b32.xlu0 %v756_v50, %s2274_s25  ;;  %v757_v61 = vmul.f32 %v756_v50, %v2498_v62 }
 0x96a   :  { %v693_v51 = vpop.permute.xlu1 %692 }
 0x96b   :  { %v695_v52 = vmul.f32 %v693_v51, %v689_v48 }
 0x96d   :  { %697 = vrot.lane.b32.xlu1 %v695_v52, %s2274_s25 }
 0x96e   :  { %v760_v53 = vpop.permute.xlu0 %759 }
 0x96f   :  { %v762_v54 = vmul.f32 %v760_v53, %v756_v50 }
 0x971   :  { %764 = vrot.lane.b32.xlu0 %v762_v54, %s2274_s25 }
 0x9df   :  { %v698_v57 = vpop.permute.xlu1 %697 }
 0x9e0   :  { %v2541_v59 = vadd.f32 %v698_v57, %v690_v56 }
 0x9e2   :  { %2124 = vtanh.f32 %v2541_v59 }
 0x9e3   :  { %v765_v55 = vpop.permute.xlu0 %764 }
 0x9e4   :  { %v2545_v0 = vadd.f32 %v765_v55, %v757_v61 }
 0x9e6   :  { %2126 = vtanh.f32 %v2545_v0 }
 0x9ef   :  { %v2125_v2 = vpop.eup %2124 }
 0x9f0   :  { %703 = vrot.lane.b32.xlu1 %v2125_v2, %s2274_s25 }
 0x9f3   :  { %v2127_v5 = vpop.eup %2126 }
 0x9f4   :  { %770 = vrot.lane.b32.xlu0 %v2127_v5, %s2274_s25 }
 0xa62   :  { %v704_v6 = vpop.permute.xlu1 %703 }
 0xa63   :  { %v706_v1 = vmul.f32 %v704_v6, %v689_v48 }
 0xa65   :  { %v707_v63 = vpack.c.bf16 %v706_v1, %v706_v1 }
 0xa66   :  { %v771_v7 = vpop.permute.xlu0 %770 }
 0xa67   :  { %v773_v8 = vmul.f32 %v771_v7, %v756_v50  ;;  %822 = vrot.lane.b32.xlu1 %v707_v63, %s2271_s12 }
 0xa69   :  { %v774_v9 = vpack.c.bf16 %v773_v8, %v773_v8 }
 0xa6b   :  { %776 = vrot.lane.b32.xlu0 %v774_v9, %s2271_s12 }
 0xad9   :  { %v823_v62 = vpop.permute.xlu1 %822 }
 0xada   :  { %1944 = vmatmul.mubr.msk.bf16.vlgmr.msra.gmra.mxu1 %vm240_vm3, %v823_v62 }
 0xadb   :  { %1956 = vmatpush3.bf16.msra.mxu1 %v2363_v17  ;;  %1959 = vmatprep.mubr.msk.bf16.mxu1 %vm2276_vm2, %v2275_v18 }
 0xadc   :  { %1957 = vmatprep.subr.bf16.mxu1 %v2275_v18 }
 0xadd   :  { %v777_v10 = vpop.permute.xlu0 %776 }
 0xade   :  { %1936 = vmatmul.mubr.msk.bf16.vlgmr.msra.gmra.mxu0 %vm240_vm3, %v777_v10 }
 0xadf   :  { %1948 = vmatpush3.bf16.msra.mxu0 %v2388_v24  ;;  %1951 = vmatprep.mubr.msk.bf16.mxu0 %vm2276_vm2, %v2275_v18 }
 0xae0   :  { %1949 = vmatprep.subr.bf16.mxu0 %v2275_v18  ;;  %1958 = vmatpush3.bf16.msra.mxu1 %v2372_v19 }
 0xae1   :  { %1971 = vmatprep.subr.bf16.mxu1 %v2275_v18 }
 0xae3   :  { %1950 = vmatpush3.bf16.msra.mxu0 %v2395_v26 }
 0xae4   :  { %1963 = vmatprep.subr.bf16.mxu0 %v2275_v18 }
 0xae6   :  { %1952 = vmatmul.mubr.msk.bf16.vlgmr.msra.gmra.mxu0 %vm240_vm3, %v777_v10 }
 0xae7   :  { %1964 = vmatpush3.bf16.msra.mxu0 %v2427_v58  ;;  %1967 = vmatprep.mubr.msk.bf16.mxu0 %vm2276_vm2, %v2275_v18 }
 0xae8   :  { %1965 = vmatprep.subr.bf16.mxu0 %v2275_v18 }
 0xaeb   :  { %1966 = vmatpush3.bf16.msra.mxu0 %v2433_v60 }
 0xaec   :  { %1979 = vmatprep.subr.bf16.mxu0 %v2275_v18 }
 0xb9a   :  { %v861_v12 = vpop.f32.mrf.mxu1 }
 0xb9c   :  { %v1945_v13 = vpop.f32.mrf.mxu1 }
 0xb9e   :  { %v815_v14 = vpop.f32.mrf.mxu0  ;;  %v864_v15 = vpop.f32.mrf.mxu1 }
 0xb9f   :  { %v816_v16 = vadd.f32 %v2408_v27, %v815_v14 }
 0xba0   :  { %v1937_v20 = vpop.f32.mrf.mxu0  ;;  %v1946_v29 = vpop.f32.mrf.mxu1 }
 0xba1   :  { %v867_v30 = vadd.f32 %v861_v12, %v816_v16 }
 0xba2   :  { %v818_v31 = vpop.f32.mrf.mxu0 }
 0xba3   :  { %v1758_v32 = vmul.f32 -1.442695, %v867_v30  ;;  %v185_v31 = vadd.f32 %v2351_v4, %v2482_v25 }
 0xba4   :  { %v1938_v33 = vpop.f32.mrf.mxu0 }
 0xba5   :  { %2128 = vpow2.f32 %v1758_v32 }
 0xba6   :  { %v928_v35 = vpop.f32.mrf.mxu0 }
 0xba7   :  { %v934_v36 = vadd.f32 %v928_v35, %v182_v34 }
 0xba8   :  { %v1953_v37 = vpop.f32.mrf.mxu0 }
 0xba9   :  { %v1760_v38 = vmul.f32 -1.442695, %v934_v36 }
 0xbaa   :  { %v931_v39 = vpop.f32.mrf.mxu0 }
 0xbab   :  { %2130 = vpow2.f32 %v1760_v38 }
 0xbac   :  { %v1954_v40 = vpop.f32.mrf.mxu0  ;;  %2132 = vtanh.f32 %v867_v30 }
 0xbb2   :  { %v2129_v41 = vpop.eup %2128 }
 0xbb3   :  { %v871_v42 = vadd.f32 1.0, %v2129_v41 }
 0xbb5   :  { %2134 = vrcp.f32 %v871_v42 }
 0xbb6   :  { %2136 = vtanh.f32 %v934_v36 }
 0xbb8   :  { %v2131_v43 = vpop.eup %2130 }
 0xbb9   :  { %v938_v44 = vadd.f32 1.0, %v2131_v43  ;;  %v2133_v45 = vpop.eup %2132 }
 0xbbb   :  { %2138 = vrcp.f32 %v938_v44 }
 0xbc2   :  { %v2135_v46 = vpop.eup %2134 }
 0xbc3   :  { %v875_v22 = vsel %vm198_vm1, %v2135_v46, %v2133_v45  ;;  %v2137_v28 = vpop.eup %2136 }
 0xbc4   :  { %878 = vrot.lane.b32.xlu1 %v875_v22, %s2274_s25  ;;  %v876_v52 = vmul.f32 %v875_v22, %v2541_v59 }
 0xbc8   :  { %v2139_v47 = vpop.eup %2138 }
 0xbc9   :  { %v942_v48 = vsel %vm198_vm1, %v2139_v47, %v2137_v28 }
 0xbca   :  { %945 = vrot.lane.b32.xlu0 %v942_v48, %s2274_s25  ;;  %v943_v56 = vmul.f32 %v942_v48, %v2545_v0 }
 0xc36   :  { %v879_v3 = vpop.permute.xlu1 %878 }
 0xc37   :  { %v881_v49 = vmul.f32 %v879_v3, %v875_v22 }
 0xc39   :  { %883 = vrot.lane.b32.xlu1 %v881_v49, %s2274_s25 }
 0xc3c   :  { %v946_v50 = vpop.permute.xlu0 %945 }
 0xc3d   :  { %v948_v51 = vmul.f32 %v946_v50, %v942_v48 }
 0xc3f   :  { %950 = vrot.lane.b32.xlu0 %v948_v51, %s2274_s25 }
 0xcab   :  { %v884_v53 = vpop.permute.xlu1 %883 }
 0xcac   :  { %v2585_v54 = vadd.f32 %v884_v53, %v876_v52 }
 0xcae   :  { %2140 = vtanh.f32 %v2585_v54 }
 0xcb1   :  { %v951_v57 = vpop.permute.xlu0 %950 }
 0xcb2   :  { %v2589_v61 = vadd.f32 %v951_v57, %v943_v56 }
 0xcb4   :  { %2142 = vtanh.f32 %v2589_v61 }
 0xcbb   :  { %v2141_v55 = vpop.eup %2140 }
 0xcbc   :  { %889 = vrot.lane.b32.xlu1 %v2141_v55, %s2274_s25 }
 0xcc1   :  { %v2143_v2 = vpop.eup %2142 }
 0xcc2   :  { %956 = vrot.lane.b32.xlu0 %v2143_v2, %s2274_s25 }
 0xd2e   :  { %v890_v5 = vpop.permute.xlu1 %889 }
 0xd2f   :  { %v892_v59 = vmul.f32 %v890_v5, %v875_v22 }
 0xd31   :  { %v893_v6 = vpack.c.bf16 %v892_v59, %v892_v59 }
 0xd33   :  { %1008 = vrot.lane.b32.xlu1 %v893_v6, %s2271_s12 }
 0xd34   :  { %v957_v1 = vpop.permute.xlu0 %956 }
 0xd35   :  { %v959_v63 = vmul.f32 %v957_v1, %v942_v48 }
 0xd37   :  { %v960_v7 = vpack.c.bf16 %v959_v63, %v959_v63 }
 0xd39   :  { %962 = vrot.lane.b32.xlu0 %v960_v7, %s2271_s12 }
 0xda5   :  { %v1009_v0 = vpop.permute.xlu1 %1008 }
 0xda6   :  { %1968 = vmatmul.mubr.msk.bf16.vlgmr.msra.gmra.mxu0 %vm240_vm3, %v1009_v0 }
 0xda7   :  { %1980 = vmatpush3.bf16.msra.mxu0 %v2363_v17  ;;  %1983 = vmatprep.mubr.msk.bf16.mxu0 %vm2276_vm2, %v2275_v18 }
 0xda8   :  { %1981 = vmatprep.subr.bf16.mxu0 %v2275_v18 }
 0xdab   :  { %v963_v8 = vpop.permute.xlu0 %962  ;;  %1982 = vmatpush3.bf16.msra.mxu0 %v2372_v19 }
 0xdac   :  { %1960 = vmatmul.mubr.msk.bf16.vlgmr.msra.gmra.mxu1 %vm240_vm3, %v963_v8  ;;  %1995 = vmatprep.subr.bf16.mxu0 %v2275_v18 }
 0xdad   :  { %1972 = vmatpush3.bf16.msra.mxu1 %v2388_v24  ;;  %1975 = vmatprep.mubr.msk.bf16.mxu1 %vm2276_vm2, %v2275_v18 }
 0xdae   :  { %1973 = vmatprep.subr.bf16.mxu1 %v2275_v18 }
 0xdb1   :  { %1974 = vmatpush3.bf16.msra.mxu1 %v2395_v26 }
 0xdb2   :  { %1987 = vmatprep.subr.bf16.mxu1 %v2275_v18 }
 0xdb4   :  { %1976 = vmatmul.mubr.msk.bf16.vlgmr.msra.gmra.mxu1 %vm240_vm3, %v963_v8 }
 0xdb5   :  { %1988 = vmatpush3.bf16.msra.mxu1 %v2427_v58  ;;  %1991 = vmatprep.mubr.msk.bf16.mxu1 %vm2276_vm2, %v2275_v18 }
 0xdb6   :  { %1989 = vmatprep.subr.bf16.mxu1 %v2275_v18 }
 0xdb9   :  { %1990 = vmatpush3.bf16.msra.mxu1 %v2433_v60 }
 0xdba   :  { %2003 = vmatprep.subr.bf16.mxu1 %v2275_v18 }
 0xe66   :  { %v1047_v9 = vpop.f32.mrf.mxu0 }
 0xe68   :  { %v1969_v62 = vpop.f32.mrf.mxu0 }
 0xe6a   :  { %v1050_v10 = vpop.f32.mrf.mxu0 }
 0xe6c   :  { %v1001_v12 = vpop.f32.mrf.mxu1  ;;  %v1970_v13 = vpop.f32.mrf.mxu0 }
 0xe6d   :  { %v1002_v14 = vadd.f32 %v2408_v27, %v1001_v12 }
 0xe6e   :  { %v1961_v15 = vpop.f32.mrf.mxu1 }
 0xe6f   :  { %v1053_v16 = vadd.f32 %v1047_v9, %v1002_v14  ;;  %v190_v14 = vadd.f32 %v2476_v21, %v2351_v4 }
 0xe70   :  { %v1004_v20 = vpop.f32.mrf.mxu1 }
 0xe71   :  { %v1763_v29 = vmul.f32 -1.442695, %v1053_v16 }
 0xe72   :  { %v1962_v30 = vpop.f32.mrf.mxu1 }
 0xe73   :  { %2144 = vpow2.f32 %v1763_v29 }
 0xe74   :  { %v1114_v32 = vpop.f32.mrf.mxu1 }
 0xe75   :  { %v1120_v33 = vadd.f32 %v1114_v32, %v185_v31 }
 0xe76   :  { %v1977_v34 = vpop.f32.mrf.mxu1 }
 0xe77   :  { %v1765_v35 = vmul.f32 -1.442695, %v1120_v33 }
 0xe78   :  { %v1117_v36 = vpop.f32.mrf.mxu1 }
 0xe79   :  { %2146 = vpow2.f32 %v1765_v35 }
 0xe7a   :  { %v1978_v37 = vpop.f32.mrf.mxu1  ;;  %2148 = vtanh.f32 %v1053_v16 }
 0xe80   :  { %v2145_v38 = vpop.eup %2144 }
 0xe81   :  { %v1057_v39 = vadd.f32 1.0, %v2145_v38 }
 0xe83   :  { %2150 = vrcp.f32 %v1057_v39 }
 0xe84   :  { %2152 = vtanh.f32 %v1120_v33 }
 0xe86   :  { %v2147_v40 = vpop.eup %2146 }
 0xe87   :  { %v1124_v41 = vadd.f32 1.0, %v2147_v40  ;;  %v2149_v42 = vpop.eup %2148 }
 0xe89   :  { %2154 = vrcp.f32 %v1124_v41 }
 0xe90   :  { %v2151_v43 = vpop.eup %2150 }
 0xe91   :  { %v1061_v25 = vsel %vm198_vm1, %v2151_v43, %v2149_v42  ;;  %v2153_v44 = vpop.eup %2152 }
 0xe92   :  { %1064 = vrot.lane.b32.xlu1 %v1061_v25, %s2274_s25  ;;  %v1062_v3 = vmul.f32 %v1061_v25, %v2585_v54 }
 0xe96   :  { %v2155_v45 = vpop.eup %2154 }
 0xe97   :  { %v1128_v46 = vsel %vm198_vm1, %v2155_v45, %v2153_v44 }
 0xe98   :  { %1131 = vrot.lane.b32.xlu0 %v1128_v46, %s2274_s25  ;;  %v1129_v51 = vmul.f32 %v1128_v46, %v2589_v61 }
 0xf04   :  { %v1065_v22 = vpop.permute.xlu1 %1064 }
 0xf05   :  { %v1067_v28 = vmul.f32 %v1065_v22, %v1061_v25 }
 0xf07   :  { %1069 = vrot.lane.b32.xlu1 %v1067_v28, %s2274_s25 }
 0xf0a   :  { %v1132_v47 = vpop.permute.xlu0 %1131 }
 0xf0b   :  { %v1134_v48 = vmul.f32 %v1132_v47, %v1128_v46 }
 0xf0d   :  { %1136 = vrot.lane.b32.xlu0 %v1134_v48, %s2274_s25 }
 0xf79   :  { %v1070_v49 = vpop.permute.xlu1 %1069 }
 0xf7a   :  { %v2629_v50 = vadd.f32 %v1070_v49, %v1062_v3 }
 0xf7c   :  { %2156 = vtanh.f32 %v2629_v50 }
 0xf7f   :  { %v1137_v52 = vpop.permute.xlu0 %1136 }
 0xf80   :  { %v2633_v53 = vadd.f32 %v1137_v52, %v1129_v51 }
 0xf82   :  { %2158 = vtanh.f32 %v2633_v53 }
 0xf89   :  { %v2157_v56 = vpop.eup %2156 }
 0xf8a   :  { %1075 = vrot.lane.b32.xlu1 %v2157_v56, %s2274_s25 }
 0xf8f   :  { %v2159_v57 = vpop.eup %2158 }
 0xf90   :  { %1142 = vrot.lane.b32.xlu0 %v2159_v57, %s2274_s25  ;;  %v2200_v57 = vld [vmem:[%s2752_s4 + $0x8] sm:$0xff]  }
 0xffc   :  { %v1076_v55 = vpop.permute.xlu1 %1075 }
 0xffd   :  { %v1078_v54 = vmul.f32 %v1076_v55, %v1061_v25 }
 0xfff   :  { %v1079_v2 = vpack.c.bf16 %v1078_v54, %v1078_v54  ;;  %v2201_v54 = vld [vmem:[%s2752_s4] sm:$0xff]  }
0x1001   :  { %1194 = vrot.lane.b32.xlu1 %v1079_v2, %s2271_s12 }
0x1002   :  { %v1143_v5 = vpop.permute.xlu0 %1142 }
0x1003   :  { %v1145_v59 = vmul.f32 %v1143_v5, %v1128_v46 }
0x1005   :  { %v1146_v6 = vpack.c.bf16 %v1145_v59, %v1145_v59 }
0x1007   :  { %1148 = vrot.lane.b32.xlu0 %v1146_v6, %s2271_s12 }
0x1073   :  { %v1195_v61 = vpop.permute.xlu1 %1194 }
0x1074   :  { %1992 = vmatmul.mubr.msk.bf16.vlgmr.msra.gmra.mxu1 %vm240_vm3, %v1195_v61 }
0x1075   :  { %2004 = vmatpush3.bf16.msra.mxu1 %v2363_v17  ;;  %2007 = vmatprep.mubr.msk.bf16.mxu1 %vm2276_vm2, %v2275_v18 }
0x1076   :  { %2005 = vmatprep.subr.bf16.mxu1 %v2275_v18 }
0x1079   :  { %v1149_v1 = vpop.permute.xlu0 %1148  ;;  %2006 = vmatpush3.bf16.msra.mxu1 %v2372_v19 }
0x107a   :  { %1984 = vmatmul.mubr.msk.bf16.vlgmr.msra.gmra.mxu0 %vm240_vm3, %v1149_v1  ;;  %2019 = vmatprep.subr.bf16.mxu1 %v2275_v18 }
0x107b   :  { %1996 = vmatpush3.bf16.msra.mxu0 %v2388_v24  ;;  %1999 = vmatprep.mubr.msk.bf16.mxu0 %vm2276_vm2, %v2275_v18 }
0x107c   :  { %1997 = vmatprep.subr.bf16.mxu0 %v2275_v18 }
0x107f   :  { %1998 = vmatpush3.bf16.msra.mxu0 %v2395_v26 }
0x1080   :  { %2011 = vmatprep.subr.bf16.mxu0 %v2275_v18 }
0x1082   :  { %2000 = vmatmul.mubr.msk.bf16.vlgmr.msra.gmra.mxu0 %vm240_vm3, %v1149_v1 }
0x1083   :  { %2012 = vmatpush3.bf16.msra.mxu0 %v2427_v58  ;;  %2015 = vmatprep.mubr.msk.bf16.mxu0 %vm2276_vm2, %v2275_v18 }
0x1084   :  { %2013 = vmatprep.subr.bf16.mxu0 %v2275_v18 }
0x1087   :  { %2014 = vmatpush3.bf16.msra.mxu0 %v2433_v60 }
0x1088   :  { %2027 = vmatprep.subr.bf16.mxu0 %v2275_v18 }
0x1134   :  { %v1233_v17 = vpop.f32.mrf.mxu1 }
0x1136   :  { %v1993_v19 = vpop.f32.mrf.mxu1 }
0x1138   :  { %v1236_v63 = vpop.f32.mrf.mxu1 }
0x113a   :  { %v1187_v7 = vpop.f32.mrf.mxu0  ;;  %v1994_v0 = vpop.f32.mrf.mxu1 }
0x113b   :  { %v1188_v8 = vadd.f32 %v2408_v27, %v1187_v7 }
0x113c   :  { %v1985_v9 = vpop.f32.mrf.mxu0 }
0x113d   :  { %v1239_v62 = vadd.f32 %v1233_v17, %v1188_v8 }
0x113e   :  { %v1190_v10 = vpop.f32.mrf.mxu0 }
0x113f   :  { %v1768_v12 = vmul.f32 -1.442695, %v1239_v62 }
0x1140   :  { %v1986_v13 = vpop.f32.mrf.mxu0 }
0x1141   :  { %2160 = vpow2.f32 %v1768_v12 }
0x1142   :  { %v1300_v15 = vpop.f32.mrf.mxu0 }
0x1143   :  { %v1306_v16 = vadd.f32 %v1300_v15, %v190_v14 }
0x1144   :  { %v2001_v20 = vpop.f32.mrf.mxu0 }
0x1145   :  { %v1770_v29 = vmul.f32 -1.442695, %v1306_v16 }
0x1146   :  { %v1303_v30 = vpop.f32.mrf.mxu0 }
0x1147   :  { %2162 = vpow2.f32 %v1770_v29 }
0x1148   :  { %v2002_v31 = vpop.f32.mrf.mxu0  ;;  %2164 = vtanh.f32 %v1239_v62 }
0x114e   :  { %v2161_v32 = vpop.eup %2160 }
0x114f   :  { %v1243_v33 = vadd.f32 1.0, %v2161_v32 }
0x1151   :  { %2166 = vrcp.f32 %v1243_v33 }
0x1152   :  { %2168 = vtanh.f32 %v1306_v16 }
0x1154   :  { %v2163_v34 = vpop.eup %2162 }
0x1155   :  { %v1310_v35 = vadd.f32 1.0, %v2163_v34  ;;  %v2165_v36 = vpop.eup %2164 }
0x1157   :  { %2170 = vrcp.f32 %v1310_v35 }
0x115e   :  { %v2167_v37 = vpop.eup %2166 }
0x115f   :  { %v1247_v4 = vsel %vm198_vm1, %v2167_v37, %v2165_v36  ;;  %v2169_v21 = vpop.eup %2168 }
0x1160   :  { %1250 = vrot.lane.b32.xlu1 %v1247_v4, %s2274_s25  ;;  %v1248_v25 = vmul.f32 %v1247_v4, %v2629_v50 }
0x1164   :  { %v2171_v38 = vpop.eup %2170 }
0x1165   :  { %v1314_v39 = vsel %vm198_vm1, %v2171_v38, %v2169_v21 }
0x1166   :  { %1317 = vrot.lane.b32.xlu0 %v1314_v39, %s2274_s25  ;;  %v1315_v46 = vmul.f32 %v1314_v39, %v2633_v53 }
0x11d2   :  { %v1251_v40 = vpop.permute.xlu1 %1250 }
0x11d3   :  { %v1253_v41 = vmul.f32 %v1251_v40, %v1247_v4 }
0x11d5   :  { %1255 = vrot.lane.b32.xlu1 %v1253_v41, %s2274_s25 }
0x11d8   :  { %v1318_v42 = vpop.permute.xlu0 %1317 }
0x11d9   :  { %v1320_v43 = vmul.f32 %v1318_v42, %v1314_v39 }
0x11db   :  { %1322 = vrot.lane.b32.xlu0 %v1320_v43, %s2274_s25 }
0x1247   :  { %v1256_v44 = vpop.permute.xlu1 %1255 }
0x1248   :  { %v2673_v45 = vadd.f32 %v1256_v44, %v1248_v25 }
0x124a   :  { %2172 = vtanh.f32 %v2673_v45 }
0x124d   :  { %v1323_v22 = vpop.permute.xlu0 %1322 }
0x124e   :  { %v2677_v28 = vadd.f32 %v1323_v22, %v1315_v46 }
0x1250   :  { %2174 = vtanh.f32 %v2677_v28 }
0x1257   :  { %v2173_v47 = vpop.eup %2172 }
0x1258   :  { %1261 = vrot.lane.b32.xlu1 %v2173_v47, %s2274_s25 }
0x125d   :  { %v2175_v48 = vpop.eup %2174 }
0x125e   :  { %1328 = vrot.lane.b32.xlu0 %v2175_v48, %s2274_s25 }
0x12ca   :  { %v1262_v3 = vpop.permute.xlu1 %1261 }
0x12cb   :  { %v1264_v49 = vmul.f32 %v1262_v3, %v1247_v4 }
0x12cd   :  { %v1265_v50 = vpack.c.bf16 %v1264_v49, %v1264_v49 }
0x12cf   :  { %1380 = vrot.lane.b32.xlu1 %v1265_v50, %s2271_s12  ;;  %v2203_v50 = vld [vmem:[%s2754_s6] ss:$0 sm:$0xff] }
0x12d0   :  { %v1329_v51 = vpop.permute.xlu0 %1328 }
0x12d1   :  { %v1331_v52 = vmul.f32 %v1329_v51, %v1314_v39 }
0x12d3   :  { %v1332_v56 = vpack.c.bf16 %v1331_v52, %v1331_v52 }
0x12d5   :  { %1334 = vrot.lane.b32.xlu0 %v1332_v56, %s2271_s12 }
0x1341   :  { %v1381_v53 = vpop.permute.xlu1 %1380 }
0x1342   :  { %2016 = vmatmul.mubr.msk.bf16.vlgmr.msra.gmra.mxu0 %vm240_vm3, %v1381_v53 }
0x1343   :  { %2028 = vmatpush3.bf16.msra.mxu0 %v2200_v57  ;;  %2031 = vmatprep.mubr.msk.bf16.mxu0 %vm2276_vm2, %v2275_v18 }
0x1344   :  { %2029 = vmatprep.subr.bf16.mxu0 %v2275_v18 }
0x1347   :  { %v1335_v55 = vpop.permute.xlu0 %1334  ;;  %2030 = vmatpush3.bf16.msra.mxu0 %v2201_v54 }
0x1348   :  { %2008 = vmatmul.mubr.msk.bf16.vlgmr.msra.gmra.mxu1 %vm240_vm3, %v1335_v55  ;;  %2043 = vmatprep.subr.bf16.mxu0 %v2275_v18 }
0x1349   :  { %2020 = vmatpush3.bf16.msra.mxu1 %v2388_v24  ;;  %2023 = vmatprep.mubr.msk.bf16.mxu1 %vm2276_vm2, %v2275_v18 }
0x134a   :  { %2021 = vmatprep.subr.bf16.mxu1 %v2275_v18 }
0x134d   :  { %2022 = vmatpush3.bf16.msra.mxu1 %v2395_v26 }
0x134e   :  { %2035 = vmatprep.subr.bf16.mxu1 %v2275_v18 }
0x1350   :  { %2024 = vmatmul.mubr.msk.bf16.vlgmr.msra.gmra.mxu1 %vm240_vm3, %v1335_v55 }
0x1351   :  { %2036 = vmatpush3.bf16.msra.mxu1 %v2427_v58  ;;  %2039 = vmatprep.mubr.msk.bf16.mxu1 %vm2276_vm2, %v2275_v18  ;;  %v2202_v58 = vld [vmem:[%s2751_s3] ss:$0 sm:$0xff] }
0x1352   :  { %2037 = vmatprep.subr.bf16.mxu1 %v2275_v18  ;;  %v193_v7 = vadd.f32 %v2202_v58, %v2480_v23 }
0x1355   :  { %2038 = vmatpush3.bf16.msra.mxu1 %v2433_v60 }
0x1402   :  { %v1419_v24 = vpop.f32.mrf.mxu0 }
0x1404   :  { %v2017_v2 = vpop.f32.mrf.mxu0 }
0x1406   :  { %v1422_v5 = vpop.f32.mrf.mxu0 }
0x1408   :  { %v1373_v59 = vpop.f32.mrf.mxu1  ;;  %v2018_v6 = vpop.f32.mrf.mxu0 }
0x1409   :  { %v1374_v26 = vadd.f32 %v2408_v27, %v1373_v59 }
0x140a   :  { %v2009_v61 = vpop.f32.mrf.mxu1 }
0x140b   :  { %v1425_v1 = vadd.f32 %v1419_v24, %v1374_v26 }
0x140c   :  { %v1376_v17 = vpop.f32.mrf.mxu1 }
0x140d   :  { %v1773_v19 = vmul.f32 -1.442695, %v1425_v1 }
0x140e   :  { %v2010_v63 = vpop.f32.mrf.mxu1 }
0x140f   :  { %2176 = vpow2.f32 %v1773_v19  ;;  %v2070_v19 = vld [vmem:[#allocation5 + $0x8] sm:$0xff]   ;;  %v2071_v63 = vld [vmem:[#allocation5] sm:$0xff]  }
0x1410   :  { %v1486_v60 = vpop.f32.mrf.mxu1 }
0x1411   :  { %v1492_v0 = vadd.f32 %v1486_v60, %v193_v7 }
0x1412   :  { %v2025_v8 = vpop.f32.mrf.mxu1 }
0x1413   :  { %v1775_v9 = vmul.f32 -1.442695, %v1492_v0  ;;  %v1779_v8 = vld [vmem:[%s2756_s8] ss:$0 sm:$0xff] }
0x1414   :  { %v1489_v62 = vpop.f32.mrf.mxu1 }
0x1415   :  { %2178 = vpow2.f32 %v1775_v9 }
0x1416   :  { %v2026_v10 = vpop.f32.mrf.mxu1  ;;  %2180 = vtanh.f32 %v1425_v1 }
0x141c   :  { %v2177_v27 = vpop.eup %2176 }
0x141d   :  { %v1429_v12 = vadd.f32 1.0, %v2177_v27 }
0x141f   :  { %2182 = vrcp.f32 %v1429_v12 }
0x1420   :  { %2184 = vtanh.f32 %v1492_v0 }
0x1422   :  { %v2179_v13 = vpop.eup %2178 }
0x1423   :  { %v1496_v14 = vadd.f32 1.0, %v2179_v13  ;;  %v2181_v15 = vpop.eup %2180 }
0x1425   :  { %2186 = vrcp.f32 %v1496_v14 }
0x142c   :  { %v2183_v16 = vpop.eup %2182 }
0x142d   :  { %v1433_v23 = vsel %vm198_vm1, %v2183_v16, %v2181_v15  ;;  %v2185_v20 = vpop.eup %2184 }
0x142e   :  { %1436 = vrot.lane.b32.xlu1 %v1433_v23, %s2274_s25  ;;  %v1434_v35 = vmul.f32 %v1433_v23, %v2673_v45 }
0x1432   :  { %v2187_v29 = vpop.eup %2186 }
0x1433   :  { %v1500_v30 = vsel %vm198_vm1, %v2187_v29, %v2185_v20 }
0x1434   :  { %1503 = vrot.lane.b32.xlu0 %v1500_v30, %s2274_s25  ;;  %v1501_v4 = vmul.f32 %v1500_v30, %v2677_v28 }
0x14a0   :  { %v1437_v31 = vpop.permute.xlu1 %1436 }
0x14a1   :  { %v1439_v32 = vmul.f32 %v1437_v31, %v1433_v23 }
0x14a3   :  { %1441 = vrot.lane.b32.xlu1 %v1439_v32, %s2274_s25 }
0x14a6   :  { %v1504_v33 = vpop.permute.xlu0 %1503 }
0x14a7   :  { %v1506_v34 = vmul.f32 %v1504_v33, %v1500_v30 }
0x14a9   :  { %1508 = vrot.lane.b32.xlu0 %v1506_v34, %s2274_s25 }
0x1515   :  { %v1442_v36 = vpop.permute.xlu1 %1441 }
0x1516   :  { %v1444_v37 = vadd.f32 %v1442_v36, %v1434_v35 }
0x1518   :  { %2188 = vtanh.f32 %v1444_v37 }
0x151b   :  { %v1509_v21 = vpop.permute.xlu0 %1508 }
0x151c   :  { %v1511_v38 = vadd.f32 %v1509_v21, %v1501_v4 }
0x151e   :  { %2190 = vtanh.f32 %v1511_v38 }
0x1525   :  { %v2189_v39 = vpop.eup %2188 }
0x1526   :  { %1447 = vrot.lane.b32.xlu1 %v2189_v39, %s2274_s25 }
0x152b   :  { %v2191_v40 = vpop.eup %2190 }
0x152c   :  { %1514 = vrot.lane.b32.xlu0 %v2191_v40, %s2274_s25 }
0x1598   :  { %v1448_v41 = vpop.permute.xlu1 %1447 }
0x1599   :  { %v1450_v42 = vmul.f32 %v1448_v41, %v1433_v23 }
0x159b   :  { %v1451_v43 = vpack.c.bf16 %v1450_v42, %v1450_v42 }
0x159d   :  { %1566 = vrot.lane.b32.xlu1 %v1451_v43, %s2271_s12 }
0x159e   :  { %v1515_v25 = vpop.permute.xlu0 %1514 }
0x159f   :  { %v1517_v44 = vmul.f32 %v1515_v25, %v1500_v30 }
0x15a1   :  { %v1518_v45 = vpack.c.bf16 %v1517_v44, %v1517_v44 }
0x15a3   :  { %1520 = vrot.lane.b32.xlu0 %v1518_v45, %s2271_s12 }
0x160f   :  { %v1567_v46 = vpop.permute.xlu1 %1566 }
0x1610   :  { %2040 = vmatmul.mubr.msk.bf16.vlgmr.msra.gmra.mxu1 %vm240_vm3, %v1567_v46 }
0x1615   :  { %v1521_v22 = vpop.permute.xlu0 %1520 }
0x1616   :  { %2032 = vmatmul.mubr.msk.bf16.vlgmr.msra.gmra.mxu0 %vm240_vm3, %v1521_v22 }
0x1617   :  { %2047 = vmatprep.mubr.msk.bf16.mxu0 %vm2276_vm2, %v2275_v18  ;;  %2044 = vmatpush3.bf16.msra.mxu0 %v2070_v19 }
0x1618   :  { %2045 = vmatprep.subr.bf16.mxu0 %v2275_v18 }
0x161b   :  { %2046 = vmatpush3.bf16.msra.mxu0 %v2071_v63 }
0x16d0   :  { %v1605_v28 = vpop.f32.mrf.mxu1 }
0x16d2   :  { %v2041_v47 = vpop.f32.mrf.mxu1 }
0x16d4   :  { %v1608_v48 = vpop.f32.mrf.mxu1 }
0x16d6   :  { %v1559_v3 = vpop.f32.mrf.mxu0  ;;  %v2042_v49 = vpop.f32.mrf.mxu1 }
0x16d7   :  { %v1560_v51 = vadd.f32 %v2203_v50, %v1559_v3 }
0x16d8   :  { %v2033_v52 = vpop.f32.mrf.mxu0 }
0x16d9   :  { %v1611_v56 = vadd.f32 %v1605_v28, %v1560_v51 }
0x16da   :  { %v1562_v53 = vpop.f32.mrf.mxu0 }
0x16db   :  { %v1778_v57 = vmul.f32 -1.442695, %v1611_v56 }
0x16dc   :  { %v2034_v55 = vpop.f32.mrf.mxu0 }
0x16dd   :  { %2192 = vpow2.f32 %v1778_v57 }
0x16de   :  { %2194 = vtanh.f32 %v1611_v56 }
0x16ea   :  { %v2193_v54 = vpop.eup %2192 }
0x16eb   :  { %v1615_v24 = vadd.f32 1.0, %v2193_v54  ;;  %v2195_v2 = vpop.eup %2194 }
0x16ed   :  { %2196 = vrcp.f32 %v1615_v24 }
0x16fa   :  { %v2197_v5 = vpop.eup %2196 }
0x16fb   :  { %v1619_v59 = vsel %vm198_vm1, %v2197_v5, %v2195_v2 }
0x16fc   :  { %1622 = vrot.lane.b32.xlu0 %v1619_v59, %s2274_s25  ;;  %v1620_v61 = vmul.f32 %v1619_v59, %v1444_v37 }
0x176e   :  { %v1623_v6 = vpop.permute.xlu0 %1622 }
0x176f   :  { %v1625_v26 = vmul.f32 %v1623_v6, %v1619_v59 }
0x1771   :  { %1627 = vrot.lane.b32.xlu1 %v1625_v26, %s2274_s25 }
0x17e3   :  { %v1628_v1 = vpop.permute.xlu1 %1627 }
0x17e4   :  { %v1630_v17 = vadd.f32 %v1628_v1, %v1620_v61 }
0x17e6   :  { %2198 = vtanh.f32 %v1630_v17 }
0x17f3   :  { %v2199_v58 = vpop.eup %2198 }
0x17f4   :  { %1633 = vrot.lane.b32.xlu0 %v2199_v58, %s2274_s25  ;;  %s2244_s25 = scalar_lea.vmem %s1715_s28, 128 }
0x17f5   :  { %p2245_p10 = scmp.ne.s32.totalorder %s1715_s28, %s2244_s25  ;;  %p2250_p12 = scmp.lt.s32.totalorder %s2244_s25, %s2244_s25 }
0x17f7   :  { %p2251_p13 = por %p2250_p12, %p2249_p11 }
0x17f9   :  { %p2252_p0 = pnand %p2251_p13, %p2245_p10 }
0x1866   :  { %v1634_v11 = vpop.permute.xlu0 %1633 }
0x1867   :  { %v1636_v7 = vmul.f32 %v1634_v11, %v1619_v59 }
0x1869   :  { %v1637_v60 = vpack.c.bf16 %v1636_v7, %v1636_v7 }
0x186b   :  { %1650 = vrot.lane.b32.xlu1 %v1637_v60, %s2271_s12 }
0x18dd   :  { %v1651_v0 = vpop.permute.xlu1 %1650 }
0x18de   :  { %2048 = vmatmul.mubr.msk.bf16.vlgmr.msra.gmra.mxu0 %vm240_vm3, %v1651_v0 }
0x199e   :  { %v1701_v9 = vpop.f32.mrf.mxu0 }
0x199f   :  { %v1702_v18 = vadd.f32 %v1779_v8, %v1701_v9 }
0x19a0   :  { %v2049_v62 = vpop.f32.mrf.mxu0 }
0x19a1   :  { %1707 = vst [vmem:[#allocation7] sm:$0xff] %v1702_v18 }
0x19a2   :  { %v1704_v10 = vpop.f32.mrf.mxu0 }
0x19a3   :  { %2255 = shalt.err (!%p2252_p0)
}
0x19a4   :  { %1717 = dma.vmem_to_hbm [thread:$0]  %s1715_s28, 128, %s2757_s9, [#allocation4]   ;;  %v2050_v27 = vpop.f32.mrf.mxu0 }
0x19a5   :  { %2268 = dma.done.wait [#allocation4], 128  }
0x19a6   :  { %2269 = vsyncadd [#allocation4], 4294967168 }
0x19a7   :  { %1721 = vsyncpa [#allocation3], 1 }
0x19a8   :  { %1722 = vsyncpa [#allocation6], 1 }
0x19a9   :  { %1723 = vsyncpa [#allocation4], 1 }

</bundles_post_ra>
